<compile_context>
chip_gen: v6e
topology: v6e:2x2x1
jax: 0.10.0
libtpu: 0.0.40
codegen_flags: <defaults>
</compile_context>

<pallas_src>
import functools

import jax
import jax.numpy as jnp
from jax.experimental import pallas as pl
from jax.experimental.pallas import tpu as pltpu


_DEFAULT_BATCH_TILE = 512  # multiple of 128; fills MXU M dim and amortizes grid overhead

# Layer widths of the PyTorch module: d_input_dim -> 1024 -> 512 -> 256 -> 1
_H1, _H2, _H3 = 1024, 512, 256


def _round_up(n, m):
    return (n + m - 1) // m * m


def _leaky_relu(v, negative_slope=0.2):
    return jnp.where(v >= 0, v, negative_slope * v)


def _vmem_limit_bytes():
    # v7x has only 64 MiB physical VMEM per TC; leave headroom for compiler
    # scratch / double buffers instead of hard-coding a single number.
    try:
        cap = pltpu.get_tpu_info().vmem_capacity_bytes
        return int(min(cap // 2, 64 << 20))
    except Exception:
        return 32 << 20


def discriminator_kernel(
    x_ref,
    w1_ref, b1_ref,
    w2_ref, b2_ref,
    w3_ref, b3_ref,
    w4_ref, b4_ref,
    o_ref,
):
    # Activations fed to the MXU in bf16 (full-rate matmul), accumulate in f32,
    # keep bias-add / leaky_relu / sigmoid in f32.
    x = x_ref[...].astype(jnp.bfloat16)

    # fc1 -> leaky_relu -> (dropout = identity, eval mode)
    h = jnp.dot(x, w1_ref[...], preferred_element_type=jnp.float32)
    h = _leaky_relu(h + b1_ref[...])

    # fc2 -> leaky_relu -> (dropout = identity)
    h = jnp.dot(h.astype(jnp.bfloat16), w2_ref[...], preferred_element_type=jnp.float32)
    h = _leaky_relu(h + b2_ref[...])

    # fc3 -> leaky_relu -> (dropout = identity)
    h = jnp.dot(h.astype(jnp.bfloat16), w3_ref[...], preferred_element_type=jnp.float32)
    h = _leaky_relu(h + b3_ref[...])

    # fc4: (tb, 256) x (256, 1). N=1 on the MXU wastes 255/256 lanes plus the
    # full result-drain latency, so do it as a VPU multiply + lane reduction
    # (w4 is stored as a (1, 256) f32 row).
    logits = jnp.sum(h * w4_ref[...], axis=-1, keepdims=True) + b4_ref[...]
    o_ref[...] = jax.nn.sigmoid(logits)


def _resident_spec(shape):
    # Whole array, same block every grid step -> stays VMEM-resident (no re-DMA).
    nd = len(shape)
    return pl.BlockSpec(shape, lambda i: (0,) * nd)


@functools.partial(jax.jit, static_argnames=("batch_tile",))
def discriminator_forward(x, params, batch_tile=_DEFAULT_BATCH_TILE):
    """params: w1..w3 bf16 (in,out), w4 f32 (1,256) row, b1..b4 f32 (1,out)."""
    B, D = x.shape
    w1, b1 = params["w1"], params["b1"]
    w2, b2 = params["w2"], params["b2"]
    w3, b3 = params["w3"], params["b3"]
    w4, b4 = params["w4"], params["b4"]

    # Batch tile: big for real GAN batches, otherwise the (8-aligned) batch itself.
    tb = batch_tile if B >= batch_tile else max(8, _round_up(B, 8))
    B_pad = _round_up(B, tb)
    if B_pad != B:
        x = jnp.pad(x, ((0, B_pad - B), (0, 0)))
    num_tiles = pl.cdiv(B_pad, tb)

    in_specs = [
        pl.BlockSpec((tb, D), lambda i: (i, 0)),       # x: tiled over batch
        _resident_spec(w1.shape), _resident_spec(b1.shape),
        _resident_spec(w2.shape), _resident_spec(b2.shape),
        _resident_spec(w3.shape), _resident_spec(b3.shape),
        _resident_spec(w4.shape), _resident_spec(b4.shape),
    ]
    out_spec = pl.BlockSpec((tb, 1), lambda i: (i, 0))

    # Advisory cost hint for XLA's scheduler around the custom call.
    flops = 2 * B_pad * (D * _H1 + _H1 * _H2 + _H2 * _H3 + _H3 * 1)
    bytes_accessed = (
        x.size * x.dtype.itemsize
        + sum(p.size * p.dtype.itemsize for p in (w1, b1, w2, b2, w3, b3, w4, b4))
        + B_pad * 4
    )
    cost = pl.CostEstimate(flops=flops, transcendentals=B_pad, bytes_accessed=bytes_accessed)

    out = pl.pallas_call(
        discriminator_kernel,
        out_shape=jax.ShapeDtypeStruct((B_pad, 1), jnp.float32),
        grid=(num_tiles,),
        in_specs=in_specs,
        out_specs=out_spec,
        compiler_params=pltpu.CompilerParams(
            dimension_semantics=("parallel",),   # megacore batch sharding on v7x
            vmem_limit_bytes=_vmem_limit_bytes(),
        ),
        cost_estimate=cost,
    )(x, w1, b1, w2, b2, w3, b3, w4, b4)

    return out[:B]


def init_discriminator_params(key, d_input_dim):
    """Deterministic PyTorch-style init: U(-1/sqrt(fan_in), 1/sqrt(fan_in))."""
    dims = [(d_input_dim, _H1), (_H1, _H2), (_H2, _H3), (_H3, 1)]
    params = {}
    for idx, (fan_in, fan_out) in enumerate(dims, start=1):
        key, kw, kb = jax.random.split(key, 3)
        bound = 1.0 / jnp.sqrt(jnp.float32(fan_in))
        # PyTorch stores (out, in); kernel wants (in, out).
        w_pt = jax.random.uniform(kw, (fan_out, fan_in), jnp.float32, -bound, bound)
        b_pt = jax.random.uniform(kb, (fan_out,), jnp.float32, -bound, bound)
        if idx < 4:
            # Matmul weights stored bf16: halves HBM weight traffic and feeds
            # the MXU at full bf16 rate on all generations.
            params[f"w{idx}"] = jnp.transpose(w_pt).astype(jnp.bfloat16)   # (in, out)
        else:
            # fc4 weight kept f32 as a (1, in) row for the VPU multiply+reduce.
            params["w4"] = w_pt.reshape(1, fan_in)                         # (1, 256)
        params[f"b{idx}"] = b_pt.reshape(1, fan_out)                       # (1, out)
    return params


def _reference_forward(x, params):
    # Pure-JAX reference (same eval-mode semantics, same bf16 weight storage).
    h = x
    for i in (1, 2, 3):
        w = params[f"w{i}"].astype(jnp.float32)
        h = h @ w + params[f"b{i}"]
        h = jnp.where(h >= 0, h, 0.2 * h)
    logits = jnp.sum(h * params["w4"], axis=-1, keepdims=True) + params["b4"]
    return jax.nn.sigmoid(logits)


if __name__ == "__main__":
    key = jax.random.PRNGKey(0)
    d_input_dim = 256
    batch = 8

    kparams, kx = jax.random.split(key)
    params = init_discriminator_params(kparams, d_input_dim)
    x = jax.random.normal(kx, (batch, d_input_dim), jnp.float32)

    out = discriminator_forward(x, params)
    out = jax.block_until_ready(out)

    ref = _reference_forward(x, params)
    assert out.shape == (batch, 1), out.shape
    # bf16 activation casts inside the kernel vs f32-activation reference:
    # allow a few e-3 of drift on the sigmoid output.
    assert jnp.allclose(out, ref, atol=2e-2, rtol=2e-2), (
        "mismatch vs reference: max abs err "
        f"{float(jnp.max(jnp.abs(out - ref)))}"
    )

    print("KERNEL_OK")
</pallas_src>

<mosaic_0001>
module attributes {stable_mosaic.version = 11 : i64} {
  func.func @discriminator_kernel(%arg0: i32, %arg1: memref<8x256xf32, #tpu.memory_space<vmem>>, %arg2: memref<256x1024xbf16, #tpu.memory_space<vmem>>, %arg3: memref<1x1024xf32, #tpu.memory_space<vmem>>, %arg4: memref<1024x512xbf16, #tpu.memory_space<vmem>>, %arg5: memref<1x512xf32, #tpu.memory_space<vmem>>, %arg6: memref<512x256xbf16, #tpu.memory_space<vmem>>, %arg7: memref<1x256xf32, #tpu.memory_space<vmem>>, %arg8: memref<1x256xf32, #tpu.memory_space<vmem>>, %arg9: memref<1x1xf32, #tpu.memory_space<vmem>>, %arg10: memref<8x1xf32, #tpu.memory_space<vmem>>) attributes {dimension_semantics = [#tpu.dimension_semantics<parallel>], iteration_bounds = array<i64: 1>, scalar_prefetch = 0 : i64, scratch_operands = 0 : i64, tpu.core_type = #tpu.core_type<tc>, window_params = [{transform_indices = @transform_0, window_bounds = array<i64: 8, 256>}, {pipeline_mode = #tpu.pipeline_mode<synchronous>, transform_indices = @transform_1, window_bounds = array<i64: 256, 1024>}, {pipeline_mode = #tpu.pipeline_mode<synchronous>, transform_indices = @transform_2, window_bounds = array<i64: 1, 1024>}, {pipeline_mode = #tpu.pipeline_mode<synchronous>, transform_indices = @transform_3, window_bounds = array<i64: 1024, 512>}, {pipeline_mode = #tpu.pipeline_mode<synchronous>, transform_indices = @transform_4, window_bounds = array<i64: 1, 512>}, {pipeline_mode = #tpu.pipeline_mode<synchronous>, transform_indices = @transform_5, window_bounds = array<i64: 512, 256>}, {pipeline_mode = #tpu.pipeline_mode<synchronous>, transform_indices = @transform_6, window_bounds = array<i64: 1, 256>}, {pipeline_mode = #tpu.pipeline_mode<synchronous>, transform_indices = @transform_7, window_bounds = array<i64: 1, 256>}, {pipeline_mode = #tpu.pipeline_mode<synchronous>, transform_indices = @transform_8, window_bounds = array<i64: 1, 1>}, {transform_indices = @transform_9, window_bounds = array<i64: 8, 1>}]} {
    %c0 = arith.constant 0 : index
    %c0_0 = arith.constant 0 : index
    %0 = vector.load %arg1[%c0, %c0_0] : memref<8x256xf32, #tpu.memory_space<vmem>>, vector<8x256xf32>
    %1 = arith.truncf %0 : vector<8x256xf32> to vector<8x256xbf16>
    %c0_1 = arith.constant 0 : index
    %c0_2 = arith.constant 0 : index
    %2 = vector.load %arg2[%c0_1, %c0_2] : memref<256x1024xbf16, #tpu.memory_space<vmem>>, vector<256x1024xbf16>
    %cst = arith.constant dense<0.000000e+00> : vector<8x1024xf32>
    %3 = tpu.matmul %1, %2, %cst {dimension_numbers = #tpu.dot_dimension_numbers<[1], [0], [0], [1], [0, 0, 1, 1], [], []>} : vector<8x256xbf16>, vector<256x1024xbf16>, vector<8x1024xf32> -> vector<8x1024xf32>
    %c0_3 = arith.constant 0 : index
    %c0_4 = arith.constant 0 : index
    %4 = vector.load %arg3[%c0_3, %c0_4] : memref<1x1024xf32, #tpu.memory_space<vmem>>, vector<1x1024xf32>
    %5 = vector.broadcast %4 : vector<1x1024xf32> to vector<8x1024xf32>
    %6 = arith.addf %3, %5 : vector<8x1024xf32>
    %cst_5 = arith.constant 0.000000e+00 : f32
    %7 = vector.broadcast %cst_5 : f32 to vector<8x1024xf32>
    %8 = arith.cmpf oge, %6, %7 : vector<8x1024xf32>
    %cst_6 = arith.constant 2.000000e-01 : f32
    %9 = vector.broadcast %cst_6 : f32 to vector<8x1024xf32>
    %10 = arith.mulf %9, %6 : vector<8x1024xf32>
    %11 = arith.select %8, %6, %10 : vector<8x1024xi1>, vector<8x1024xf32>
    %12 = arith.truncf %11 : vector<8x1024xf32> to vector<8x1024xbf16>
    %c0_7 = arith.constant 0 : index
    %c0_8 = arith.constant 0 : index
    %13 = vector.load %arg4[%c0_7, %c0_8] : memref<1024x512xbf16, #tpu.memory_space<vmem>>, vector<1024x512xbf16>
    %cst_9 = arith.constant dense<0.000000e+00> : vector<8x512xf32>
    %14 = tpu.matmul %12, %13, %cst_9 {dimension_numbers = #tpu.dot_dimension_numbers<[1], [0], [0], [1], [0, 0, 1, 1], [], []>} : vector<8x1024xbf16>, vector<1024x512xbf16>, vector<8x512xf32> -> vector<8x512xf32>
    %c0_10 = arith.constant 0 : index
    %c0_11 = arith.constant 0 : index
    %15 = vector.load %arg5[%c0_10, %c0_11] : memref<1x512xf32, #tpu.memory_space<vmem>>, vector<1x512xf32>
    %16 = vector.broadcast %15 : vector<1x512xf32> to vector<8x512xf32>
    %17 = arith.addf %14, %16 : vector<8x512xf32>
    %cst_12 = arith.constant 0.000000e+00 : f32
    %18 = vector.broadcast %cst_12 : f32 to vector<8x512xf32>
    %19 = arith.cmpf oge, %17, %18 : vector<8x512xf32>
    %cst_13 = arith.constant 2.000000e-01 : f32
    %20 = vector.broadcast %cst_13 : f32 to vector<8x512xf32>
    %21 = arith.mulf %20, %17 : vector<8x512xf32>
    %22 = arith.select %19, %17, %21 : vector<8x512xi1>, vector<8x512xf32>
    %23 = arith.truncf %22 : vector<8x512xf32> to vector<8x512xbf16>
    %c0_14 = arith.constant 0 : index
    %c0_15 = arith.constant 0 : index
    %24 = vector.load %arg6[%c0_14, %c0_15] : memref<512x256xbf16, #tpu.memory_space<vmem>>, vector<512x256xbf16>
    %cst_16 = arith.constant dense<0.000000e+00> : vector<8x256xf32>
    %25 = tpu.matmul %23, %24, %cst_16 {dimension_numbers = #tpu.dot_dimension_numbers<[1], [0], [0], [1], [0, 0, 1, 1], [], []>} : vector<8x512xbf16>, vector<512x256xbf16>, vector<8x256xf32> -> vector<8x256xf32>
    %c0_17 = arith.constant 0 : index
    %c0_18 = arith.constant 0 : index
    %26 = vector.load %arg7[%c0_17, %c0_18] : memref<1x256xf32, #tpu.memory_space<vmem>>, vector<1x256xf32>
    %27 = vector.broadcast %26 : vector<1x256xf32> to vector<8x256xf32>
    %28 = arith.addf %25, %27 : vector<8x256xf32>
    %cst_19 = arith.constant 0.000000e+00 : f32
    %29 = vector.broadcast %cst_19 : f32 to vector<8x256xf32>
    %30 = arith.cmpf oge, %28, %29 : vector<8x256xf32>
    %cst_20 = arith.constant 2.000000e-01 : f32
    %31 = vector.broadcast %cst_20 : f32 to vector<8x256xf32>
    %32 = arith.mulf %31, %28 : vector<8x256xf32>
    %33 = arith.select %30, %28, %32 : vector<8x256xi1>, vector<8x256xf32>
    %c0_21 = arith.constant 0 : index
    %c0_22 = arith.constant 0 : index
    %34 = vector.load %arg8[%c0_21, %c0_22] : memref<1x256xf32, #tpu.memory_space<vmem>>, vector<1x256xf32>
    %35 = vector.broadcast %34 : vector<1x256xf32> to vector<8x256xf32>
    %36 = arith.mulf %33, %35 : vector<8x256xf32>
    %cst_23 = arith.constant dense<0.000000e+00> : vector<8xf32>
    %37 = vector.multi_reduction <add>, %36, %cst_23 [1] : vector<8x256xf32> to vector<8xf32>
    %38 = vector.shape_cast %37 : vector<8xf32> to vector<8x1xf32>
    %c0_24 = arith.constant 0 : index
    %c0_25 = arith.constant 0 : index
    %39 = vector.load %arg9[%c0_24, %c0_25] : memref<1x1xf32, #tpu.memory_space<vmem>>, vector<1x1xf32>
    %40 = vector.broadcast %39 : vector<1x1xf32> to vector<8x1xf32>
    %41 = arith.addf %38, %40 : vector<8x1xf32>
    %42 = arith.negf %41 : vector<8x1xf32>
    %43 = math.exp %42 : vector<8x1xf32>
    %cst_26 = arith.constant 1.000000e+00 : f32
    %44 = vector.broadcast %cst_26 : f32 to vector<8x1xf32>
    %45 = arith.addf %44, %43 : vector<8x1xf32>
    %46 = arith.divf %44, %45 : vector<8x1xf32>
    %c0_27 = arith.constant 0 : index
    %c0_28 = arith.constant 0 : index
    %47 = vector.load %arg10[%c0_27, %c0_28] : memref<8x1xf32, #tpu.memory_space<vmem>>, vector<8x1xf32>
    tpu.vector_store %arg10[%c0_27, %c0_28], %46 {strides = array<i32>} : memref<8x1xf32, #tpu.memory_space<vmem>>, vector<8x1xf32>,
    return
  }
  func.func @transform_0(%arg0: i32) -> (i32, i32) {
    %c0_i32 = arith.constant 0 : i32
    %c0_i32_0 = arith.constant 0 : i32
    return %arg0, %c0_i32 : i32, i32
  }
  func.func @transform_1(%arg0: i32) -> (i32, i32) {
    %c0_i32 = arith.constant 0 : i32
    %c0_i32_0 = arith.constant 0 : i32
    %c0_i32_1 = arith.constant 0 : i32
    return %c0_i32, %c0_i32_0 : i32, i32
  }
  func.func @transform_2(%arg0: i32) -> (i32, i32) {
    %c0_i32 = arith.constant 0 : i32
    %c0_i32_0 = arith.constant 0 : i32
    %c0_i32_1 = arith.constant 0 : i32
    return %c0_i32, %c0_i32_0 : i32, i32
  }
  func.func @transform_3(%arg0: i32) -> (i32, i32) {
    %c0_i32 = arith.constant 0 : i32
    %c0_i32_0 = arith.constant 0 : i32
    %c0_i32_1 = arith.constant 0 : i32
    return %c0_i32, %c0_i32_0 : i32, i32
  }
  func.func @transform_4(%arg0: i32) -> (i32, i32) {
    %c0_i32 = arith.constant 0 : i32
    %c0_i32_0 = arith.constant 0 : i32
    %c0_i32_1 = arith.constant 0 : i32
    return %c0_i32, %c0_i32_0 : i32, i32
  }
  func.func @transform_5(%arg0: i32) -> (i32, i32) {
    %c0_i32 = arith.constant 0 : i32
    %c0_i32_0 = arith.constant 0 : i32
    %c0_i32_1 = arith.constant 0 : i32
    return %c0_i32, %c0_i32_0 : i32, i32
  }
  func.func @transform_6(%arg0: i32) -> (i32, i32) {
    %c0_i32 = arith.constant 0 : i32
    %c0_i32_0 = arith.constant 0 : i32
    %c0_i32_1 = arith.constant 0 : i32
    return %c0_i32, %c0_i32_0 : i32, i32
  }
  func.func @transform_7(%arg0: i32) -> (i32, i32) {
    %c0_i32 = arith.constant 0 : i32
    %c0_i32_0 = arith.constant 0 : i32
    %c0_i32_1 = arith.constant 0 : i32
    return %c0_i32, %c0_i32_0 : i32, i32
  }
  func.func @transform_8(%arg0: i32) -> (i32, i32) {
    %c0_i32 = arith.constant 0 : i32
    %c0_i32_0 = arith.constant 0 : i32
    %c0_i32_1 = arith.constant 0 : i32
    return %c0_i32, %c0_i32_0 : i32, i32
  }
  func.func @transform_9(%arg0: i32) -> (i32, i32) {
    %c0_i32 = arith.constant 0 : i32
    %c0_i32_0 = arith.constant 0 : i32
    return %arg0, %c0_i32 : i32, i32
  }
}

</mosaic_0001>

<bundles_post_ra>
// kernel: discriminator_forward.1
= control target key start
LH: loop header
LB: loop body
LE: loop exit
PB: predicated region body
PF: predicated region fallthrough
CT: control target
= control target key end

     0   :  { %s4774_s0 = inlined_call_operand.hbm [shape: f32[8,256], index: 0, kind: input, shape index: {}]   ;;  %s4775_s1 = inlined_call_operand.hbm [shape: bf16[256,1024], index: 1, kind: input, shape index: {}]   ;;  %s4776_s2 = inlined_call_operand.hbm [shape: f32[1,1024], index: 2, kind: input, shape index: {}]   ;;  %s4777_s3 = inlined_call_operand.hbm [shape: bf16[1024,512], index: 3, kind: input, shape index: {}]   ;;  %s4778_s4 = inlined_call_operand.vmem [shape: f32[1,512], index: 4, kind: input, shape index: {}]   ;;  %s4779_s5 = inlined_call_operand.hbm [shape: bf16[512,256], index: 5, kind: input, shape index: {}]   ;;  %s4780_s6 = inlined_call_operand.vmem [shape: f32[1,256], index: 6, kind: input, shape index: {}]   ;;  %s4781_s7 = inlined_call_operand.vmem [shape: f32[1,256], index: 7, kind: input, shape index: {}]   ;;  %s4782_s8 = inlined_call_operand.<no memory space> [shape: f32[1,1], index: 8, kind: input, shape index: {}]   ;;  %s4783_s9 = inlined_call_operand.vmem [shape: f32[8,1], index: 9, kind: output, shape index: {}]  }
   0x1   :  { %v14_v0 = vstv %s4782_s8 }
   0x2   :  { %15 = vst [vmem:[#allocation2] sm:$0x1] %v14_v0 }
   0x3   :  { %16 = vsyncpa [#allocation4], 0 }
   0x4   :  { %17 = vsyncpa [#allocation6], 0 }
   0x5   :  { %18 = vsyncpa [#allocation9], 0  ;;  %s4585_s11 = smov [#allocation5]  }
   0x6   :  { %s34_s12 = sshll.u32 %s4585_s11, 4  ;;  %s35_s12 = int_to_ptr.vmem [resolvable:$true] %s34_s12 }
   0x7   :  { %s4487_s13 = scalar_lea.vmem %s35_s12, 16384  ;;  %p4492_p1 = scmp.lt.s32.totalorder %s35_s12, %s35_s12 }
   0x8   :  { %p4488_p0 = scmp.ne.s32.totalorder %s35_s12, %s4487_s13  ;;  %p4493_p2 = scmp.lt.s32.totalorder %s4487_s13, %s4487_s13 }
   0xa   :  { %p4494_p3 = por %p4493_p2, %p4492_p1 }
   0xc   :  { %p4495_p4 = pnand %p4494_p3, %p4488_p0 }
   0xe   :  { %4498 = shalt.err (!%p4495_p4)
}
   0xf   :  { %s4586_s14 = smov 512   ;;  %s4587_s15 = smov 32  }
  0x10   :  { %40 = dma.hbm_to_vmem [thread:$0]  %s4775_s1, 16384, %s35_s12, [#allocation6], %s4586_s14, %s4586_s14, %s4587_s15  }
  0x11   :  { %s4588_s8 = smov [#allocation8]  }
  0x12   :  { %s56_s18 = sshll.u32 %s4588_s8, 4  ;;  %s57_s18 = int_to_ptr.vmem [resolvable:$true] %s56_s18 }
  0x13   :  { %s4507_s19 = scalar_lea.vmem %s57_s18, 32768  ;;  %p4512_p6 = scmp.lt.s32.totalorder %s57_s18, %s57_s18 }
  0x14   :  { %p4508_p5 = scmp.ne.s32.totalorder %s57_s18, %s4507_s19  ;;  %p4513_p7 = scmp.lt.s32.totalorder %s4507_s19, %s4507_s19 }
  0x16   :  { %p4514_p8 = por %p4513_p7, %p4512_p6 }
  0x18   :  { %p4515_p9 = pnand %p4514_p8, %p4508_p5 }
  0x1a   :  { %4518 = shalt.err (!%p4515_p9)
}
  0x1b   :  { %s4589_s20 = smov 256   ;;  %s4590_s21 = smov 16  }
  0x1c   :  { %62 = dma.hbm_to_vmem [thread:$0]  %s4777_s3, 32768, %s57_s18, [#allocation9], %s4589_s20, %s4589_s20, %s4590_s21  }
  0x1d   :  { %s4591_s24 = smov [#allocation3]   ;;  %s4592_s26 = smov [#allocation7]  }
  0x1e   :  { %s25_s25 = sshll.u32 %s4591_s24, 4  ;;  %s47_s1 = sshll.u32 %s4592_s26, 4  ;;  %s26_s25 = int_to_ptr.vmem [resolvable:$true] %s25_s25  ;;  %s48_s1 = int_to_ptr.vmem [resolvable:$true] %s47_s1 }
  0x1f   :  { %s4527_s27 = scalar_lea.vmem %s26_s25, 256  ;;  %p4532_p11 = scmp.lt.s32.totalorder %s26_s25, %s26_s25 }
  0x20   :  { %p4528_p10 = scmp.ne.s32.totalorder %s26_s25, %s4527_s27  ;;  %p4533_p12 = scmp.lt.s32.totalorder %s4527_s27, %s4527_s27 }
  0x22   :  { %p4534_p13 = por %p4533_p12, %p4532_p11 }
  0x24   :  { %p4535_p0 = pnand %p4534_p13, %p4528_p10 }
  0x26   :  { %4538 = shalt.err (!%p4535_p0)
}
  0x27   :  { %28 = dma.hbm_to_vmem [thread:$0]  %s4774_s0, 256, %s26_s25, [#allocation4]  }
  0x28   :  { %s4547_s30 = scalar_lea.vmem %s48_s1, 128  ;;  %p4552_p2 = scmp.lt.s32.totalorder %s48_s1, %s48_s1 }
  0x29   :  { %p4548_p1 = scmp.ne.s32.totalorder %s48_s1, %s4547_s30  ;;  %p4553_p3 = scmp.lt.s32.totalorder %s4547_s30, %s4547_s30 }
  0x2b   :  { %p4554_p4 = por %p4553_p3, %p4552_p2 }
  0x2d   :  { %p4555_p5 = pnand %p4554_p4, %p4548_p1 }
  0x2f   :  { %4558 = shalt.err (!%p4555_p5)
}
  0x30   :  { %50 = dma.hbm_to_vmem [thread:$0]  %s4776_s2, 128, %s48_s1, [#allocation6]  }
  0x31   :  { %s4593_s11 = smov [#allocation10]  }
  0x32   :  { %s70_s12 = sshll.u32 %s4593_s11, 4  ;;  %s71_s12 = int_to_ptr.vmem [resolvable:$true] %s70_s12 }
  0x33   :  { %s4567_s13 = scalar_lea.vmem %s71_s12, 8192  ;;  %p4572_p7 = scmp.lt.s32.totalorder %s71_s12, %s71_s12 }
  0x34   :  { %p4568_p6 = scmp.ne.s32.totalorder %s71_s12, %s4567_s13  ;;  %p4573_p8 = scmp.lt.s32.totalorder %s4567_s13, %s4567_s13 }
  0x36   :  { %p4574_p9 = por %p4573_p8, %p4572_p7 }
  0x38   :  { %p4575_p10 = pnand %p4574_p9, %p4568_p6 }
  0x3a   :  { %4578 = shalt.err (!%p4575_p10)
}
  0x3b   :  { %s4594_s0 = smov 128   ;;  %s4595_s14 = smov 8  }
  0x3c   :  { %76 = dma.hbm_to_vmem [thread:$0]  %s4779_s5, 8192, %s71_s12, [#allocation9], %s4594_s0, %s4594_s0, %s4595_s14  }
  0x3d   :  { %4579 = dma.done.wait [#allocation4], 256  }
  0x3e   :  { %4580 = vsyncadd [#allocation4], 4294967040 }
  0x3f   :  { %4581 = dma.done.wait [#allocation6], 16512  }
  0x40   :  { %4582 = vsyncadd [#allocation6], 4294950784 }
  0x41   :  { %4583 = dma.done.wait [#allocation9], 40960  }
  0x42   :  { %4584 = vsyncadd [#allocation9], 4294926336  ;;  %v158_v1 = vld [vmem:[#allocation5 + $0x1c0] sm:$0xff]  ;;  %v159_v3 = vld [vmem:[#allocation5 + $0x1c8] sm:$0xff]  ;;  %vm3525_vm14 = vcmask 7168  }
  0x43   :  { %v162_v2 = vld [vmem:[#allocation5 + $0x1e0] sm:$0xff]  ;;  %v163_v5 = vld [vmem:[#allocation5 + $0x1e8] sm:$0xff]  ;;  %v99_v54 = vld [vmem:[#allocation3 + $0x8] sm:$0xff] }
  0x44   :  { %v3591_v4 = vcombine.high %v158_v1, %v162_v2  ;;  %v3590_v6 = vcombine.low %v158_v1, %v162_v2  ;;  %v150_v7 = vld [vmem:[#allocation5 + $0x180] sm:$0xff]  ;;  %v3593_v9 = vcombine.high %v159_v3, %v163_v5  ;;  %v3592_v10 = vcombine.low %v159_v3, %v163_v5  ;;  %v151_v12 = vld [vmem:[#allocation5 + $0x188] sm:$0xff] }
  0x45   :  { %v154_v8 = vld [vmem:[#allocation5 + $0x1a0] sm:$0xff]  ;;  %v155_v13 = vld [vmem:[#allocation5 + $0x1a8] sm:$0xff]  ;;  %v4664_v58 = vpack.c.bf16 %v99_v54, %v99_v54 }
  0x46   :  { %v3583_v11 = vcombine.high %v150_v7, %v154_v8  ;;  %v142_v14 = vld [vmem:[#allocation5 + $0x140] sm:$0xff]  ;;  %912 = vmatprep.subr.bf16.mxu0 %v3591_v4  ;;  %v3585_v15 = vcombine.high %v151_v12, %v155_v13  ;;  %v143_v17 = vld [vmem:[#allocation5 + $0x148] sm:$0xff]  ;;  %953 = vmatprep.subr.bf16.mxu1 %v3593_v9  ;;  %v3582_v19 = vcombine.low %v150_v7, %v154_v8 }
  0x47   :  { %v146_v16 = vld [vmem:[#allocation5 + $0x160] sm:$0xff]  ;;  %v147_v18 = vld [vmem:[#allocation5 + $0x168] sm:$0xff]  ;;  %913 = vmatpush1.bf16.msra.mxu0 %v3590_v6  ;;  %954 = vmatpush1.bf16.msra.mxu1 %v3592_v10  ;;  %v3584_v20 = vcombine.low %v151_v12, %v155_v13 }
  0x48   :  { %914 = vmatprep.subr.bf16.mxu0 %v3583_v11  ;;  %v3575_v21 = vcombine.high %v142_v14, %v146_v16  ;;  %955 = vmatprep.subr.bf16.mxu1 %v3585_v15  ;;  %v3577_v22 = vcombine.high %v143_v17, %v147_v18  ;;  %v134_v23 = vld [vmem:[#allocation5 + $0x100] sm:$0xff]  ;;  %v135_v25 = vld [vmem:[#allocation5 + $0x108] sm:$0xff]  ;;  %v3574_v27 = vcombine.low %v142_v14, %v146_v16 }
  0x49   :  { %v138_v24 = vld [vmem:[#allocation5 + $0x120] sm:$0xff]  ;;  %v139_v26 = vld [vmem:[#allocation5 + $0x128] sm:$0xff]  ;;  %v3576_v28 = vcombine.low %v143_v17, %v147_v18  ;;  %944 = vmatprep.mubr.bf16.mxu0 %v4664_v58  ;;  %985 = vmatprep.mubr.bf16.mxu1 %v4664_v58 }
  0x4a   :  { %v3567_v29 = vcombine.high %v134_v23, %v138_v24  ;;  %v3569_v30 = vcombine.high %v135_v25, %v139_v26  ;;  %v126_v31 = vld [vmem:[#allocation5 + $0xc0] sm:$0xff]  ;;  %v127_v33 = vld [vmem:[#allocation5 + $0xc8] sm:$0xff]  ;;  %v3566_v35 = vcombine.low %v134_v23, %v138_v24  ;;  %v3568_v36 = vcombine.low %v135_v25, %v139_v26 }
  0x4b   :  { %915 = vmatpush1.bf16.msra.mxu0 %v3582_v19  ;;  %956 = vmatpush1.bf16.msra.mxu1 %v3584_v20  ;;  %v130_v32 = vld [vmem:[#allocation5 + $0xe0] sm:$0xff]  ;;  %v131_v34 = vld [vmem:[#allocation5 + $0xe8] sm:$0xff] }
  0x4c   :  { %916 = vmatprep.subr.bf16.mxu0 %v3575_v21  ;;  %957 = vmatprep.subr.bf16.mxu1 %v3577_v22  ;;  %v3559_v37 = vcombine.high %v126_v31, %v130_v32  ;;  %v3561_v38 = vcombine.high %v127_v33, %v131_v34  ;;  %v118_v39 = vld [vmem:[#allocation5 + $0x80] sm:$0xff]  ;;  %v119_v41 = vld [vmem:[#allocation5 + $0x88] sm:$0xff]  ;;  %v3558_v43 = vcombine.low %v126_v31, %v130_v32 }
  0x4d   :  { %v122_v40 = vld [vmem:[#allocation5 + $0xa0] sm:$0xff]  ;;  %v123_v42 = vld [vmem:[#allocation5 + $0xa8] sm:$0xff]  ;;  %v3560_v44 = vcombine.low %v127_v33, %v131_v34 }
  0x4e   :  { %v3551_v45 = vcombine.high %v118_v39, %v122_v40  ;;  %v3553_v46 = vcombine.high %v119_v41, %v123_v42  ;;  %v110_v47 = vld [vmem:[#allocation5 + $0x40] sm:$0xff]  ;;  %v111_v49 = vld [vmem:[#allocation5 + $0x48] sm:$0xff]  ;;  %v3550_v51 = vcombine.low %v118_v39, %v122_v40  ;;  %v3552_v52 = vcombine.low %v119_v41, %v123_v42 }
  0x4f   :  { %917 = vmatpush1.bf16.msra.mxu0 %v3574_v27  ;;  %958 = vmatpush1.bf16.msra.mxu1 %v3576_v28  ;;  %v114_v48 = vld [vmem:[#allocation5 + $0x60] sm:$0xff]  ;;  %v115_v50 = vld [vmem:[#allocation5 + $0x68] sm:$0xff] }
  0x50   :  { %918 = vmatprep.subr.bf16.mxu0 %v3567_v29  ;;  %959 = vmatprep.subr.bf16.mxu1 %v3569_v30  ;;  %v3543_v53 = vcombine.high %v110_v47, %v114_v48  ;;  %v3545_v55 = vcombine.high %v111_v49, %v115_v50  ;;  %v102_v56 = vld [vmem:[#allocation5] sm:$0xff]  ;;  %v103_v59 = vld [vmem:[#allocation5 + $0x8] sm:$0xff]  ;;  %v3542_v61 = vcombine.low %v110_v47, %v114_v48 }
  0x51   :  { %v106_v57 = vld [vmem:[#allocation5 + $0x20] sm:$0xff]  ;;  %v107_v60 = vld [vmem:[#allocation5 + $0x28] sm:$0xff]  ;;  %v3544_v62 = vcombine.low %v111_v49, %v115_v50 }
  0x52   :  { %v3535_v63 = vcombine.high %v102_v56, %v106_v57  ;;  %v3537_v0 = vcombine.high %v103_v59, %v107_v60  ;;  %v222_v1 = vld [vmem:[#allocation5 + $0x3c0] sm:$0xff]  ;;  %v223_v3 = vld [vmem:[#allocation5 + $0x3c8] sm:$0xff]  ;;  %v3534_v5 = vcombine.low %v102_v56, %v106_v57  ;;  %v3536_v6 = vcombine.low %v103_v59, %v107_v60 }
  0x53   :  { %919 = vmatpush1.bf16.msra.mxu0 %v3566_v35  ;;  %960 = vmatpush1.bf16.msra.mxu1 %v3568_v36  ;;  %v226_v2 = vld [vmem:[#allocation5 + $0x3e0] sm:$0xff]  ;;  %v227_v4 = vld [vmem:[#allocation5 + $0x3e8] sm:$0xff] }
  0x54   :  { %920 = vmatprep.subr.bf16.mxu0 %v3559_v37  ;;  %961 = vmatprep.subr.bf16.mxu1 %v3561_v38  ;;  %v3655_v7 = vcombine.high %v222_v1, %v226_v2  ;;  %v3657_v8 = vcombine.high %v223_v3, %v227_v4  ;;  %v214_v9 = vld [vmem:[#allocation5 + $0x380] sm:$0xff]  ;;  %v215_v11 = vld [vmem:[#allocation5 + $0x388] sm:$0xff]  ;;  %v3654_v13 = vcombine.low %v222_v1, %v226_v2  ;;  %v160_v1 = vld [vmem:[#allocation5 + $0x1d0] sm:$0xff] }
  0x55   :  { %v218_v10 = vld [vmem:[#allocation5 + $0x3a0] sm:$0xff]  ;;  %v219_v12 = vld [vmem:[#allocation5 + $0x3a8] sm:$0xff]  ;;  %v3656_v14 = vcombine.low %v223_v3, %v227_v4  ;;  %v164_v2 = vld [vmem:[#allocation5 + $0x1f0] sm:$0xff] }
  0x56   :  { %v3647_v15 = vcombine.high %v214_v9, %v218_v10  ;;  %v3649_v16 = vcombine.high %v215_v11, %v219_v12  ;;  %v206_v17 = vld [vmem:[#allocation5 + $0x340] sm:$0xff]  ;;  %v207_v19 = vld [vmem:[#allocation5 + $0x348] sm:$0xff]  ;;  %v3646_v21 = vcombine.low %v214_v9, %v218_v10  ;;  %v3648_v22 = vcombine.low %v215_v11, %v219_v12  ;;  %v161_v4 = vld [vmem:[#allocation5 + $0x1d8] sm:$0xff] }
  0x57   :  { %921 = vmatpush1.bf16.msra.mxu0 %v3558_v43  ;;  %962 = vmatpush1.bf16.msra.mxu1 %v3560_v44  ;;  %v210_v18 = vld [vmem:[#allocation5 + $0x360] sm:$0xff]  ;;  %v211_v20 = vld [vmem:[#allocation5 + $0x368] sm:$0xff]  ;;  %v3595_v9 = vcombine.high %v160_v1, %v164_v2  ;;  %v152_v10 = vld [vmem:[#allocation5 + $0x190] sm:$0xff] }
  0x58   :  { %922 = vmatprep.subr.bf16.mxu0 %v3551_v45  ;;  %963 = vmatprep.subr.bf16.mxu1 %v3553_v46  ;;  %v3639_v23 = vcombine.high %v206_v17, %v210_v18  ;;  %v3641_v24 = vcombine.high %v207_v19, %v211_v20  ;;  %v198_v25 = vld [vmem:[#allocation5 + $0x300] sm:$0xff]  ;;  %v199_v27 = vld [vmem:[#allocation5 + $0x308] sm:$0xff]  ;;  %v3638_v29 = vcombine.low %v206_v17, %v210_v18  ;;  %v156_v11 = vld [vmem:[#allocation5 + $0x1b0] sm:$0xff] }
  0x59   :  { %v202_v26 = vld [vmem:[#allocation5 + $0x320] sm:$0xff]  ;;  %v203_v28 = vld [vmem:[#allocation5 + $0x328] sm:$0xff]  ;;  %v3640_v30 = vcombine.low %v207_v19, %v211_v20  ;;  %v3587_v18 = vcombine.high %v152_v10, %v156_v11  ;;  %v144_v19 = vld [vmem:[#allocation5 + $0x150] sm:$0xff] }
  0x5a   :  { %v3631_v31 = vcombine.high %v198_v25, %v202_v26  ;;  %v3633_v32 = vcombine.high %v199_v27, %v203_v28  ;;  %v190_v33 = vld [vmem:[#allocation5 + $0x2c0] sm:$0xff]  ;;  %v191_v35 = vld [vmem:[#allocation5 + $0x2c8] sm:$0xff]  ;;  %v3630_v37 = vcombine.low %v198_v25, %v202_v26  ;;  %v3632_v38 = vcombine.low %v199_v27, %v203_v28  ;;  %v148_v20 = vld [vmem:[#allocation5 + $0x170] sm:$0xff] }
  0x5b   :  { %923 = vmatpush1.bf16.msra.mxu0 %v3550_v51  ;;  %964 = vmatpush1.bf16.msra.mxu1 %v3552_v52  ;;  %v194_v34 = vld [vmem:[#allocation5 + $0x2e0] sm:$0xff]  ;;  %v195_v36 = vld [vmem:[#allocation5 + $0x2e8] sm:$0xff]  ;;  %v3579_v26 = vcombine.high %v144_v19, %v148_v20  ;;  %v136_v27 = vld [vmem:[#allocation5 + $0x110] sm:$0xff] }
  0x5c   :  { %924 = vmatprep.subr.bf16.mxu0 %v3543_v53  ;;  %965 = vmatprep.subr.bf16.mxu1 %v3545_v55  ;;  %v3623_v39 = vcombine.high %v190_v33, %v194_v34  ;;  %v182_v40 = vld [vmem:[#allocation5 + $0x280] sm:$0xff]  ;;  %v3625_v42 = vcombine.high %v191_v35, %v195_v36  ;;  %v183_v43 = vld [vmem:[#allocation5 + $0x288] sm:$0xff]  ;;  %v3622_v45 = vcombine.low %v190_v33, %v194_v34  ;;  %v140_v28 = vld [vmem:[#allocation5 + $0x130] sm:$0xff] }
  0x5d   :  { %v186_v41 = vld [vmem:[#allocation5 + $0x2a0] sm:$0xff]  ;;  %v187_v44 = vld [vmem:[#allocation5 + $0x2a8] sm:$0xff]  ;;  %v3624_v46 = vcombine.low %v191_v35, %v195_v36  ;;  %v3571_v34 = vcombine.high %v136_v27, %v140_v28  ;;  %v128_v35 = vld [vmem:[#allocation5 + $0xd0] sm:$0xff] }
  0x5e   :  { %v3615_v47 = vcombine.high %v182_v40, %v186_v41  ;;  %v174_v48 = vld [vmem:[#allocation5 + $0x240] sm:$0xff]  ;;  %v3617_v50 = vcombine.high %v183_v43, %v187_v44  ;;  %v175_v51 = vld [vmem:[#allocation5 + $0x248] sm:$0xff]  ;;  %v3614_v53 = vcombine.low %v182_v40, %v186_v41  ;;  %v3616_v54 = vcombine.low %v183_v43, %v187_v44  ;;  %v132_v36 = vld [vmem:[#allocation5 + $0xf0] sm:$0xff] }
  0x5f   :  { %925 = vmatpush1.bf16.msra.mxu0 %v3542_v61  ;;  %966 = vmatpush1.bf16.msra.mxu1 %v3544_v62  ;;  %v178_v49 = vld [vmem:[#allocation5 + $0x260] sm:$0xff]  ;;  %v179_v52 = vld [vmem:[#allocation5 + $0x268] sm:$0xff]  ;;  %v3570_v40 = vcombine.low %v136_v27, %v140_v28  ;;  %v120_v43 = vld [vmem:[#allocation5 + $0x90] sm:$0xff] }
  0x60   :  { %926 = vmatprep.subr.bf16.mxu0 %v3535_v63  ;;  %967 = vmatprep.subr.bf16.mxu1 %v3537_v0  ;;  %v3607_v55 = vcombine.high %v174_v48, %v178_v49  ;;  %v166_v56 = vld [vmem:[#allocation5 + $0x200] sm:$0xff]  ;;  %v3609_v59 = vcombine.high %v175_v51, %v179_v52  ;;  %v167_v60 = vld [vmem:[#allocation5 + $0x208] sm:$0xff]  ;;  %v3606_v62 = vcombine.low %v174_v48, %v178_v49  ;;  %v112_v48 = vld [vmem:[#allocation5 + $0x50] sm:$0xff] }
  0x61   :  { %v170_v57 = vld [vmem:[#allocation5 + $0x220] sm:$0xff]  ;;  %v171_v61 = vld [vmem:[#allocation5 + $0x228] sm:$0xff]  ;;  %v3608_v63 = vcombine.low %v175_v51, %v179_v52  ;;  %v116_v49 = vld [vmem:[#allocation5 + $0x70] sm:$0xff] }
  0x62   :  { %v3599_v0 = vcombine.high %v166_v56, %v170_v57  ;;  %v3601_v3 = vcombine.high %v167_v60, %v171_v61  ;;  %v113_v52 = vld [vmem:[#allocation5 + $0x58] sm:$0xff]  ;;  %v204_v27 = vld [vmem:[#allocation5 + $0x330] sm:$0xff] }
  0x63   :  { %927 = vmatpush1.bf16.msra.mxu0 %v3534_v5  ;;  %968 = vmatpush1.bf16.msra.mxu1 %v3536_v6  ;;  %v165_v5 = vld [vmem:[#allocation5 + $0x1f8] sm:$0xff]  ;;  %v3598_v6 = vcombine.low %v166_v56, %v170_v57  ;;  %v104_v56 = vld [vmem:[#allocation5 + $0x10] sm:$0xff] }
  0x64   :  { %928 = vmatprep.subr.bf16.mxu0 %v3655_v7  ;;  %969 = vmatprep.subr.bf16.mxu1 %v3657_v8  ;;  %v98_v7 = vld [vmem:[#allocation3] sm:$0xff]  ;;  %v3600_v8 = vcombine.low %v167_v60, %v171_v61  ;;  %v3597_v12 = vcombine.high %v161_v4, %v165_v5  ;;  %v3596_v17 = vcombine.low %v161_v4, %v165_v5  ;;  %v105_v61 = vld [vmem:[#allocation5 + $0x18] sm:$0xff] }
  0x65   :  { %v108_v57 = vld [vmem:[#allocation5 + $0x30] sm:$0xff]  ;;  %v3547_v60 = vcombine.high %v112_v48, %v116_v49  ;;  %v225_v5 = vld [vmem:[#allocation5 + $0x3d8] sm:$0xff] }
  0x66   :  { %v3539_v4 = vcombine.high %v104_v56, %v108_v57 }
  0x67   :  { %929 = vmatpush2.bf16.msra.mxu0 %v3654_v13  ;;  %970 = vmatpush2.bf16.msra.mxu1 %v3656_v14  ;;  %v153_v13 = vld [vmem:[#allocation5 + $0x198] sm:$0xff]  ;;  %v4668_v14 = vpack.c.bf16 %v98_v7, %v98_v7 }
  0x68   :  { %930 = vmatprep.subr.bf16.mxu0 %v3647_v15  ;;  %971 = vmatprep.subr.bf16.mxu1 %v3649_v16  ;;  %v157_v15 = vld [vmem:[#allocation5 + $0x1b8] sm:$0xff]  ;;  %v3594_v16 = vcombine.low %v160_v1, %v164_v2  ;;  %v224_v1 = vld [vmem:[#allocation5 + $0x3d0] sm:$0xff] }
  0x69   :  { %v3588_v25 = vcombine.low %v153_v13, %v157_v15  ;;  %v228_v2 = vld [vmem:[#allocation5 + $0x3f0] sm:$0xff] }
  0x6b   :  { %931 = vmatpush2.bf16.msra.mxu0 %v3646_v21  ;;  %972 = vmatpush2.bf16.msra.mxu1 %v3648_v22  ;;  %v3589_v21 = vcombine.high %v153_v13, %v157_v15  ;;  %v145_v22 = vld [vmem:[#allocation5 + $0x158] sm:$0xff] }
  0x6c   :  { %932 = vmatprep.subr.bf16.mxu0 %v3639_v23  ;;  %973 = vmatprep.subr.bf16.mxu1 %v3641_v24  ;;  %v149_v23 = vld [vmem:[#allocation5 + $0x178] sm:$0xff]  ;;  %v3586_v24 = vcombine.low %v152_v10, %v156_v11  ;;  %v220_v10 = vld [vmem:[#allocation5 + $0x3b0] sm:$0xff] }
  0x6d   :  { %v3580_v33 = vcombine.low %v145_v22, %v149_v23  ;;  %v217_v13 = vld [vmem:[#allocation5 + $0x398] sm:$0xff] }
  0x6e   :  { %v221_v15 = vld [vmem:[#allocation5 + $0x3b8] sm:$0xff] }
  0x6f   :  { %933 = vmatpush2.bf16.msra.mxu0 %v3638_v29  ;;  %974 = vmatpush2.bf16.msra.mxu1 %v3640_v30  ;;  %v3581_v29 = vcombine.high %v145_v22, %v149_v23  ;;  %v137_v30 = vld [vmem:[#allocation5 + $0x118] sm:$0xff]  ;;  %v3652_v28 = vcombine.low %v217_v13, %v221_v15 }
  0x70   :  { %934 = vmatprep.subr.bf16.mxu0 %v3631_v31  ;;  %975 = vmatprep.subr.bf16.mxu1 %v3633_v32  ;;  %v141_v31 = vld [vmem:[#allocation5 + $0x138] sm:$0xff]  ;;  %v3578_v32 = vcombine.low %v144_v19, %v148_v20  ;;  %v212_v19 = vld [vmem:[#allocation5 + $0x370] sm:$0xff] }
  0x71   :  { %v3572_v41 = vcombine.low %v137_v30, %v141_v31  ;;  %v209_v22 = vld [vmem:[#allocation5 + $0x358] sm:$0xff] }
  0x72   :  { %v213_v23 = vld [vmem:[#allocation5 + $0x378] sm:$0xff] }
  0x73   :  { %935 = vmatpush2.bf16.msra.mxu0 %v3630_v37  ;;  %976 = vmatpush2.bf16.msra.mxu1 %v3632_v38  ;;  %v3573_v37 = vcombine.high %v137_v30, %v141_v31  ;;  %v129_v38 = vld [vmem:[#allocation5 + $0xd8] sm:$0xff] }
  0x74   :  { %936 = vmatprep.subr.bf16.mxu0 %v3623_v39  ;;  %977 = vmatprep.subr.bf16.mxu1 %v3625_v42  ;;  %v133_v39 = vld [vmem:[#allocation5 + $0xf8] sm:$0xff]  ;;  %v3563_v42 = vcombine.high %v128_v35, %v132_v36 }
  0x75   :  { %v3565_v44 = vcombine.high %v129_v38, %v133_v39  ;;  %v201_v30 = vld [vmem:[#allocation5 + $0x318] sm:$0xff] }
  0x76   :  { %v205_v31 = vld [vmem:[#allocation5 + $0x338] sm:$0xff] }
  0x77   :  { %937 = vmatpush2.bf16.msra.mxu0 %v3622_v45  ;;  %978 = vmatpush2.bf16.msra.mxu1 %v3624_v46  ;;  %v121_v45 = vld [vmem:[#allocation5 + $0x98] sm:$0xff] }
  0x78   :  { %938 = vmatprep.subr.bf16.mxu0 %v3615_v47  ;;  %979 = vmatprep.subr.bf16.mxu1 %v3617_v50  ;;  %v125_v46 = vld [vmem:[#allocation5 + $0xb8] sm:$0xff]  ;;  %v3562_v47 = vcombine.low %v128_v35, %v132_v36  ;;  %v3564_v50 = vcombine.low %v129_v38, %v133_v39  ;;  %v196_v35 = vld [vmem:[#allocation5 + $0x2f0] sm:$0xff]  ;;  %v3644_v36 = vcombine.low %v209_v22, %v213_v23 }
  0x79   :  { %v193_v38 = vld [vmem:[#allocation5 + $0x2d8] sm:$0xff] }
  0x7a   :  { %v197_v39 = vld [vmem:[#allocation5 + $0x2f8] sm:$0xff] }
  0x7b   :  { %939 = vmatpush2.bf16.msra.mxu0 %v3614_v53  ;;  %980 = vmatpush2.bf16.msra.mxu1 %v3616_v54  ;;  %v117_v53 = vld [vmem:[#allocation5 + $0x78] sm:$0xff]  ;;  %v3557_v54 = vcombine.high %v121_v45, %v125_v46 }
  0x7c   :  { %940 = vmatprep.subr.bf16.mxu0 %v3607_v55  ;;  %981 = vmatprep.subr.bf16.mxu1 %v3609_v59  ;;  %v3556_v59 = vcombine.low %v121_v45, %v125_v46  ;;  %v185_v45 = vld [vmem:[#allocation5 + $0x298] sm:$0xff] }
  0x7d   :  { %v189_v46 = vld [vmem:[#allocation5 + $0x2b8] sm:$0xff] }
  0x7f   :  { %941 = vmatpush2.bf16.msra.mxu0 %v3606_v62  ;;  %982 = vmatpush2.bf16.msra.mxu1 %v3608_v63  ;;  %v109_v62 = vld [vmem:[#allocation5 + $0x38] sm:$0xff]  ;;  %v3549_v63 = vcombine.high %v113_v52, %v117_v53 }
  0x80   :  { %942 = vmatprep.subr.bf16.mxu0 %v3599_v0  ;;  %983 = vmatprep.subr.bf16.mxu1 %v3601_v3  ;;  %v3546_v0 = vcombine.low %v112_v48, %v116_v49  ;;  %v3548_v3 = vcombine.low %v113_v52, %v117_v53  ;;  %v3541_v7 = vcombine.high %v105_v61, %v109_v62  ;;  %v176_v49 = vld [vmem:[#allocation5 + $0x250] sm:$0xff]  ;;  %v177_v53 = vld [vmem:[#allocation5 + $0x258] sm:$0xff] }
  0x81   :  { %v3540_v11 = vcombine.low %v105_v61, %v109_v62  ;;  %v169_v62 = vld [vmem:[#allocation5 + $0x218] sm:$0xff] }
  0x83   :  { %943 = vmatpush2.bf16.msra.mxu0 %v3598_v6  ;;  %984 = vmatpush2.bf16.msra.mxu1 %v3600_v8  ;;  %v229_v6 = vld [vmem:[#allocation5 + $0x3f8] sm:$0xff]  ;;  %v3538_v8 = vcombine.low %v104_v56, %v108_v57  ;;  %v168_v57 = vld [vmem:[#allocation5 + $0x210] sm:$0xff] }
  0x84   :  { %994 = vmatprep.subr.bf16.mxu0 %v3595_v9  ;;  %1035 = vmatprep.subr.bf16.mxu1 %v3597_v12  ;;  %v216_v9 = vld [vmem:[#allocation5 + $0x390] sm:$0xff]  ;;  %v3659_v12 = vcombine.high %v224_v1, %v228_v2  ;;  %v3660_v20 = vcombine.low %v225_v5, %v229_v6 }
  0x86   :  { %945 = vmatmul.mubr.bf16.vlgmr.msra.gmra.mxu0 %v4668_v14  ;;  %986 = vmatmul.mubr.bf16.vlgmr.msra.gmra.mxu1 %v4668_v14 }
  0x87   :  { %995 = vmatpush1.bf16.msra.mxu0 %v3594_v16  ;;  %1036 = vmatpush1.bf16.msra.mxu1 %v3596_v17  ;;  %v3661_v16 = vcombine.high %v225_v5, %v229_v6  ;;  %v3658_v17 = vcombine.low %v224_v1, %v228_v2  ;;  %v3997_v5 = vld [vmem:[#allocation8 + $0xe4] ss:$16 sps:$4 sm:$0xff]  }
  0x88   :  { %996 = vmatprep.subr.bf16.mxu0 %v3587_v18  ;;  %1037 = vmatprep.subr.bf16.mxu1 %v3589_v21  ;;  %v208_v18 = vld [vmem:[#allocation5 + $0x350] sm:$0xff]  ;;  %v3651_v21 = vcombine.high %v216_v9, %v220_v10 }
  0x89   :  { %1026 = vmatprep.mubr.bf16.mxu0 %v4664_v58  ;;  %1067 = vmatprep.mubr.bf16.mxu1 %v4664_v58  ;;  %v124_v58 = vld [vmem:[#allocation5 + $0xb0] sm:$0xff] }
  0x8a   :  { %v3555_v51 = vcombine.high %v120_v43, %v124_v58  ;;  %v3554_v55 = vcombine.low %v120_v43, %v124_v58  ;;  %v188_v43 = vld [vmem:[#allocation5 + $0x2b0] sm:$0xff]  ;;  %v3636_v58 = vcombine.low %v201_v30, %v205_v31 }
  0x8b   :  { %997 = vmatpush1.bf16.msra.mxu0 %v3586_v24  ;;  %1038 = vmatpush1.bf16.msra.mxu1 %v3588_v25  ;;  %v3653_v24 = vcombine.high %v217_v13, %v221_v15  ;;  %v3650_v25 = vcombine.low %v216_v9, %v220_v10  ;;  %v3995_v9 = vld [vmem:[#allocation8 + $0xe0] ss:$16 sps:$4 sm:$0xff]  }
  0x8c   :  { %998 = vmatprep.subr.bf16.mxu0 %v3579_v26  ;;  %1039 = vmatprep.subr.bf16.mxu1 %v3581_v29  ;;  %v200_v26 = vld [vmem:[#allocation5 + $0x310] sm:$0xff]  ;;  %v3643_v29 = vcombine.high %v208_v18, %v212_v19  ;;  %v3998_v10 = vld [vmem:[#allocation8 + $0x2e0] ss:$16 sps:$4 sm:$0xff]  }
  0x8d   :  { %v4001_v13 = vld [vmem:[#allocation8 + $0xc0] ss:$16 sps:$4 sm:$0xff]  }
  0x8e   :  { %v4004_v15 = vld [vmem:[#allocation8 + $0x2c0] ss:$16 sps:$4 sm:$0xff]  }
  0x8f   :  { %999 = vmatpush1.bf16.msra.mxu0 %v3578_v32  ;;  %1040 = vmatpush1.bf16.msra.mxu1 %v3580_v33  ;;  %v3645_v32 = vcombine.high %v209_v22, %v213_v23  ;;  %v3642_v33 = vcombine.low %v208_v18, %v212_v19  ;;  %v4007_v18 = vld [vmem:[#allocation8 + $0xa0] ss:$16 sps:$4 sm:$0xff]  }
  0x90   :  { %1000 = vmatprep.subr.bf16.mxu0 %v3571_v34  ;;  %1041 = vmatprep.subr.bf16.mxu1 %v3573_v37  ;;  %v192_v34 = vld [vmem:[#allocation5 + $0x2d0] sm:$0xff]  ;;  %v3635_v37 = vcombine.high %v200_v26, %v204_v27  ;;  %v4010_v19 = vld [vmem:[#allocation8 + $0x2a0] ss:$16 sps:$4 sm:$0xff]  }
  0x91   :  { %v3626_v48 = vcombine.low %v192_v34, %v196_v35  ;;  %v4013_v22 = vld [vmem:[#allocation8 + $0x80] ss:$16 sps:$4 sm:$0xff]  }
  0x92   :  { %v4016_v23 = vld [vmem:[#allocation8 + $0x280] ss:$16 sps:$4 sm:$0xff]  }
  0x93   :  { %1001 = vmatpush1.bf16.msra.mxu0 %v3570_v40  ;;  %1042 = vmatpush1.bf16.msra.mxu1 %v3572_v41  ;;  %v3637_v40 = vcombine.high %v201_v30, %v205_v31  ;;  %v3634_v41 = vcombine.low %v200_v26, %v204_v27  ;;  %v4022_v26 = vld [vmem:[#allocation8 + $0x260] ss:$16 sps:$4 sm:$0xff]   ;;  %v4027_v27 = vld [vmem:[#allocation8 + $0x44] ss:$16 sps:$4 sm:$0xff]  }
  0x94   :  { %1002 = vmatprep.subr.bf16.mxu0 %v3563_v42  ;;  %1043 = vmatprep.subr.bf16.mxu1 %v3565_v44  ;;  %v184_v42 = vld [vmem:[#allocation5 + $0x290] sm:$0xff]  ;;  %v3627_v44 = vcombine.high %v192_v34, %v196_v35  ;;  %v4028_v30 = vld [vmem:[#allocation8 + $0x240] ss:$16 sps:$4 sm:$0xff]   ;;  %v4033_v31 = vld [vmem:[#allocation8 + $0x24] ss:$16 sps:$4 sm:$0xff]  }
  0x95   :  { %v3619_v52 = vcombine.high %v184_v42, %v188_v43  ;;  %v3618_v56 = vcombine.low %v184_v42, %v188_v43  ;;  %v4034_v34 = vld [vmem:[#allocation8 + $0x220] ss:$16 sps:$4 sm:$0xff]   ;;  %v4039_v35 = vld [vmem:[#allocation8 + $0x4] ss:$16 sps:$4 sm:$0xff]  }
  0x96   :  { %v4046_v42 = vld [vmem:[#allocation8 + $0x3e0] ss:$16 sps:$4 sm:$0xff]   ;;  %v4051_v43 = vld [vmem:[#allocation8 + $0x1c4] ss:$16 sps:$4 sm:$0xff]  }
  0x97   :  { %1003 = vmatpush1.bf16.msra.mxu0 %v3562_v47  ;;  %1044 = vmatpush1.bf16.msra.mxu1 %v3564_v50  ;;  %v3629_v47 = vcombine.high %v193_v38, %v197_v39  ;;  %v180_v50 = vld [vmem:[#allocation5 + $0x270] sm:$0xff] }
  0x98   :  { %1004 = vmatprep.subr.bf16.mxu0 %v3555_v51  ;;  %1045 = vmatprep.subr.bf16.mxu1 %v3557_v54  ;;  %v3628_v51 = vcombine.low %v193_v38, %v197_v39  ;;  %v181_v54 = vld [vmem:[#allocation5 + $0x278] sm:$0xff]  ;;  %v3611_v61 = vcombine.high %v176_v49, %v180_v50  ;;  %v3610_v1 = vcombine.low %v176_v49, %v180_v50 }
  0x99   :  { %v3612_v2 = vcombine.low %v177_v53, %v181_v54  ;;  %v4040_v38 = vld [vmem:[#allocation8 + $0x200] ss:$16 sps:$4 sm:$0xff]   ;;  %v4045_v39 = vld [vmem:[#allocation8 + $0x1e4] ss:$16 sps:$4 sm:$0xff]  }
  0x9a   :  { %v4058_v49 = vld [vmem:[#allocation8 + $0x3a0] ss:$16 sps:$4 sm:$0xff]   ;;  %v4063_v50 = vld [vmem:[#allocation8 + $0x184] ss:$16 sps:$4 sm:$0xff]  }
  0x9b   :  { %1005 = vmatpush1.bf16.msra.mxu0 %v3554_v55  ;;  %1046 = vmatpush1.bf16.msra.mxu1 %v3556_v59  ;;  %v3621_v55 = vcombine.high %v185_v45, %v189_v46  ;;  %v172_v59 = vld [vmem:[#allocation5 + $0x230] sm:$0xff] }
  0x9c   :  { %1006 = vmatprep.subr.bf16.mxu0 %v3547_v60  ;;  %1047 = vmatprep.subr.bf16.mxu1 %v3549_v63  ;;  %v3620_v60 = vcombine.low %v185_v45, %v189_v46  ;;  %v173_v63 = vld [vmem:[#allocation5 + $0x238] sm:$0xff]  ;;  %v3602_v6 = vcombine.low %v168_v57, %v172_v59 }
  0x9d   :  { %v4052_v45 = vld [vmem:[#allocation8 + $0x3c0] ss:$16 sps:$4 sm:$0xff]   ;;  %v4057_v46 = vld [vmem:[#allocation8 + $0x1a4] ss:$16 sps:$4 sm:$0xff]  }
  0x9f   :  { %1007 = vmatpush1.bf16.msra.mxu0 %v3546_v0  ;;  %1048 = vmatpush1.bf16.msra.mxu1 %v3548_v3  ;;  %v3613_v0 = vcombine.high %v177_v53, %v181_v54  ;;  %v3603_v3 = vcombine.high %v168_v57, %v172_v59  ;;  %v4064_v53 = vld [vmem:[#allocation8 + $0x380] ss:$16 sps:$4 sm:$0xff]   ;;  %v4069_v54 = vld [vmem:[#allocation8 + $0x164] ss:$16 sps:$4 sm:$0xff]  }
  0xa0   :  { %1008 = vmatprep.subr.bf16.mxu0 %v3539_v4  ;;  %1049 = vmatprep.subr.bf16.mxu1 %v3541_v7  ;;  %v3605_v4 = vcombine.high %v169_v62, %v173_v63  ;;  %v4000_v7 = vld [vmem:[#allocation8 + $0x2e4] ss:$16 sps:$4 sm:$0xff]   ;;  %v4070_v57 = vld [vmem:[#allocation8 + $0x360] ss:$16 sps:$4 sm:$0xff]  }
  0xa1   :  { %v4075_v59 = vld [vmem:[#allocation8 + $0x144] ss:$16 sps:$4 sm:$0xff]  }
  0xa3   :  { %1009 = vmatpush1.bf16.msra.mxu0 %v3538_v8  ;;  %1050 = vmatpush1.bf16.msra.mxu1 %v3540_v11  ;;  %v3604_v8 = vcombine.low %v169_v62, %v173_v63  ;;  %v4003_v11 = vld [vmem:[#allocation8 + $0xc4] ss:$16 sps:$4 sm:$0xff]   ;;  %v4076_v62 = vld [vmem:[#allocation8 + $0x340] ss:$16 sps:$4 sm:$0xff]  }
  0xa4   :  { %1010 = vmatprep.subr.bf16.mxu0 %v3659_v12  ;;  %1051 = vmatprep.subr.bf16.mxu1 %v3661_v16  ;;  %v4006_v12 = vld [vmem:[#allocation8 + $0x2c4] ss:$16 sps:$4 sm:$0xff]  }
  0xa5   :  { %v4009_v16 = vld [vmem:[#allocation8 + $0xa4] ss:$16 sps:$4 sm:$0xff]  }
  0xa6   :  { %v4081_v63 = vld [vmem:[#allocation8 + $0x124] ss:$16 sps:$4 sm:$0xff]  }
  0xa7   :  { %1011 = vmatpush2.bf16.msra.mxu0 %v3658_v17  ;;  %1052 = vmatpush2.bf16.msra.mxu1 %v3660_v20  ;;  %v4012_v17 = vld [vmem:[#allocation8 + $0x2a4] ss:$16 sps:$4 sm:$0xff]  }
  0xa8   :  { %1012 = vmatprep.subr.bf16.mxu0 %v3651_v21  ;;  %1053 = vmatprep.subr.bf16.mxu1 %v3653_v24  ;;  %v4015_v20 = vld [vmem:[#allocation8 + $0x84] ss:$16 sps:$4 sm:$0xff]  }
  0xa9   :  { %v4018_v21 = vld [vmem:[#allocation8 + $0x284] ss:$16 sps:$4 sm:$0xff]  }
  0xaa   :  { %v4024_v24 = vld [vmem:[#allocation8 + $0x264] ss:$16 sps:$4 sm:$0xff]  }
  0xab   :  { %1013 = vmatpush2.bf16.msra.mxu0 %v3650_v25  ;;  %1054 = vmatpush2.bf16.msra.mxu1 %v3652_v28  ;;  %v4019_v25 = vld [vmem:[#allocation8 + $0x60] ss:$16 sps:$4 sm:$0xff]   ;;  %v4030_v28 = vld [vmem:[#allocation8 + $0x244] ss:$16 sps:$4 sm:$0xff]  }
  0xac   :  { %1014 = vmatprep.subr.bf16.mxu0 %v3643_v29  ;;  %1055 = vmatprep.subr.bf16.mxu1 %v3645_v32  ;;  %v4025_v29 = vld [vmem:[#allocation8 + $0x40] ss:$16 sps:$4 sm:$0xff]   ;;  %v4036_v32 = vld [vmem:[#allocation8 + $0x224] ss:$16 sps:$4 sm:$0xff]  }
  0xaf   :  { %1015 = vmatpush2.bf16.msra.mxu0 %v3642_v33  ;;  %1056 = vmatpush2.bf16.msra.mxu1 %v3644_v36  ;;  %v4031_v33 = vld [vmem:[#allocation8 + $0x20] ss:$16 sps:$4 sm:$0xff]   ;;  %v4042_v36 = vld [vmem:[#allocation8 + $0x204] ss:$16 sps:$4 sm:$0xff]  }
  0xb0   :  { %1016 = vmatprep.subr.bf16.mxu0 %v3635_v37  ;;  %1057 = vmatprep.subr.bf16.mxu1 %v3637_v40  ;;  %v4037_v37 = vld [vmem:[#allocation8] ss:$16 sps:$4 sm:$0xff]   ;;  %v4048_v40 = vld [vmem:[#allocation8 + $0x3e4] ss:$16 sps:$4 sm:$0xff]  }
  0xb3   :  { %1017 = vmatpush2.bf16.msra.mxu0 %v3634_v41  ;;  %1058 = vmatpush2.bf16.msra.mxu1 %v3636_v58  ;;  %v4043_v41 = vld [vmem:[#allocation8 + $0x1e0] ss:$16 sps:$4 sm:$0xff]   ;;  %v4054_v58 = vld [vmem:[#allocation8 + $0x3c4] ss:$16 sps:$4 sm:$0xff]  }
  0xb4   :  { %1018 = vmatprep.subr.bf16.mxu0 %v3627_v44  ;;  %1059 = vmatprep.subr.bf16.mxu1 %v3629_v47  ;;  %v4049_v44 = vld [vmem:[#allocation8 + $0x1c0] ss:$16 sps:$4 sm:$0xff]   ;;  %v4060_v47 = vld [vmem:[#allocation8 + $0x3a4] ss:$16 sps:$4 sm:$0xff]  }
  0xb7   :  { %1019 = vmatpush2.bf16.msra.mxu0 %v3626_v48  ;;  %1060 = vmatpush2.bf16.msra.mxu1 %v3628_v51  ;;  %v4055_v48 = vld [vmem:[#allocation8 + $0x1a0] ss:$16 sps:$4 sm:$0xff]   ;;  %v4066_v51 = vld [vmem:[#allocation8 + $0x384] ss:$16 sps:$4 sm:$0xff]  }
  0xb8   :  { %1020 = vmatprep.subr.bf16.mxu0 %v3619_v52  ;;  %1061 = vmatprep.subr.bf16.mxu1 %v3621_v55  ;;  %v4061_v52 = vld [vmem:[#allocation8 + $0x180] ss:$16 sps:$4 sm:$0xff]   ;;  %v4072_v55 = vld [vmem:[#allocation8 + $0x364] ss:$16 sps:$4 sm:$0xff]  }
  0xbb   :  { %1021 = vmatpush2.bf16.msra.mxu0 %v3618_v56  ;;  %1062 = vmatpush2.bf16.msra.mxu1 %v3620_v60  ;;  %v4067_v56 = vld [vmem:[#allocation8 + $0x160] ss:$16 sps:$4 sm:$0xff]   ;;  %v4078_v60 = vld [vmem:[#allocation8 + $0x344] ss:$16 sps:$4 sm:$0xff]  }
  0xbc   :  { %1022 = vmatprep.subr.bf16.mxu0 %v3611_v61  ;;  %1063 = vmatprep.subr.bf16.mxu1 %v3613_v0  ;;  %v4073_v61 = vld [vmem:[#allocation8 + $0x140] ss:$16 sps:$4 sm:$0xff]   ;;  %v4084_v0 = vld [vmem:[#allocation8 + $0x324] ss:$16 sps:$4 sm:$0xff]  }
  0xbf   :  { %1023 = vmatpush2.bf16.msra.mxu0 %v3610_v1  ;;  %1064 = vmatpush2.bf16.msra.mxu1 %v3612_v2  ;;  %v4079_v1 = vld [vmem:[#allocation8 + $0x120] ss:$16 sps:$4 sm:$0xff]  }
  0xc0   :  { %1024 = vmatprep.subr.bf16.mxu0 %v3603_v3  ;;  %1065 = vmatprep.subr.bf16.mxu1 %v3605_v4  ;;  %v4082_v2 = vld [vmem:[#allocation8 + $0x320] ss:$16 sps:$4 sm:$0xff]   ;;  %v4087_v3 = vld [vmem:[#allocation8 + $0x104] ss:$16 sps:$4 sm:$0xff]  }
  0xc1   :  { %v4090_v4 = vld [vmem:[#allocation8 + $0x304] ss:$16 sps:$4 sm:$0xff]  }
  0xc3   :  { %1025 = vmatpush2.bf16.msra.mxu0 %v3602_v6  ;;  %1066 = vmatpush2.bf16.msra.mxu1 %v3604_v8  ;;  %v4088_v6 = vld [vmem:[#allocation8 + $0x300] ss:$16 sps:$4 sm:$0xff]   ;;  %v4096_v8 = vld [vmem:[#allocation8 + $0x6e4] ss:$16 sps:$4 sm:$0xff]  }
  0xc4   :  { %2666 = vmatprep.subr.bf16.mxu0 %v3997_v5  ;;  %2707 = vmatprep.subr.bf16.mxu1 %v4000_v7  ;;  %v4085_v5 = vld [vmem:[#allocation8 + $0x100] ss:$16 sps:$4 sm:$0xff]   ;;  %v4093_v7 = vld [vmem:[#allocation8 + $0x4e4] ss:$16 sps:$4 sm:$0xff]  }
  0xc6   :  { %1027 = vmatmul.mubr.bf16.vlgmr.msra.gmra.mxu0 %v4668_v14  ;;  %1068 = vmatmul.mubr.bf16.vlgmr.msra.gmra.mxu1 %v4668_v14  ;;  %v4021_v14 = vld [vmem:[#allocation8 + $0x64] ss:$16 sps:$4 sm:$0xff]  }
  0xc7   :  { %2667 = vmatpush1.bf16.msra.mxu0 %v3995_v9  ;;  %2708 = vmatpush1.bf16.msra.mxu1 %v3998_v10  ;;  %v232_v9 = vlaneseq }
  0xc8   :  { %2668 = vmatprep.subr.bf16.mxu0 %v4003_v11  ;;  %2709 = vmatprep.subr.bf16.mxu1 %v4006_v12  ;;  %v4681_v12 = vld [vmem:[#allocation7] sm:$0xff] }
  0xc9   :  { %v4676_v10 = vshrl.u32 %v232_v9, 7  ;;  %v4136_v9 = vld [vmem:[#allocation8 + $0x600] ss:$16 sps:$4 sm:$0xff]  }
  0xcb   :  { %2669 = vmatpush1.bf16.msra.mxu0 %v4001_v13  ;;  %2710 = vmatpush1.bf16.msra.mxu1 %v4004_v15  ;;  %v4679_v11 = vsub.s32 0, %v4676_v10  ;;  %v242_v13 = vsub.s32 2, %v4676_v10  ;;  %v4685_v15 = vsub.s32 1, %v4676_v10 }
  0xcc   :  { %2670 = vmatprep.subr.bf16.mxu0 %v4009_v16  ;;  %2711 = vmatprep.subr.bf16.mxu1 %v4012_v17  ;;  %v246_v16 = vsub.s32 3, %v4676_v10 }
  0xcd   :  { %v235_v17 = vrot.slane %v4681_v12, %v4679_v11 }
  0xcf   :  { %2671 = vmatpush1.bf16.msra.mxu0 %v4007_v18  ;;  %2712 = vmatpush1.bf16.msra.mxu1 %v4010_v19  ;;  %v243_v18 = vrot.slane %v4681_v12, %v242_v13  ;;  %v239_v19 = vrot.slane %v4681_v12, %v4685_v15 }
  0xd0   :  { %2672 = vmatprep.subr.bf16.mxu0 %v4015_v20  ;;  %2713 = vmatprep.subr.bf16.mxu1 %v4018_v21  ;;  %v247_v21 = vrot.slane %v4681_v12, %v246_v16 }
  0xd3   :  { %2673 = vmatpush1.bf16.msra.mxu0 %v4013_v22  ;;  %2714 = vmatpush1.bf16.msra.mxu1 %v4016_v23 }
  0xd4   :  { %2674 = vmatprep.subr.bf16.mxu0 %v4021_v14  ;;  %2715 = vmatprep.subr.bf16.mxu1 %v4024_v24 }
  0xd7   :  { %2675 = vmatpush1.bf16.msra.mxu0 %v4019_v25  ;;  %2716 = vmatpush1.bf16.msra.mxu1 %v4022_v26 }
  0xd8   :  { %2676 = vmatprep.subr.bf16.mxu0 %v4027_v27  ;;  %2717 = vmatprep.subr.bf16.mxu1 %v4030_v28 }
  0xdb   :  { %2677 = vmatpush1.bf16.msra.mxu0 %v4025_v29  ;;  %2718 = vmatpush1.bf16.msra.mxu1 %v4028_v30 }
  0xdc   :  { %2678 = vmatprep.subr.bf16.mxu0 %v4033_v31  ;;  %2719 = vmatprep.subr.bf16.mxu1 %v4036_v32 }
  0xdf   :  { %2679 = vmatpush1.bf16.msra.mxu0 %v4031_v33  ;;  %2720 = vmatpush1.bf16.msra.mxu1 %v4034_v34 }
  0xe0   :  { %2680 = vmatprep.subr.bf16.mxu0 %v4039_v35  ;;  %2721 = vmatprep.subr.bf16.mxu1 %v4042_v36 }
  0xe3   :  { %2681 = vmatpush1.bf16.msra.mxu0 %v4037_v37  ;;  %2722 = vmatpush1.bf16.msra.mxu1 %v4040_v38 }
  0xe4   :  { %2682 = vmatprep.subr.bf16.mxu0 %v4045_v39  ;;  %2723 = vmatprep.subr.bf16.mxu1 %v4048_v40 }
  0xe7   :  { %2683 = vmatpush2.bf16.msra.mxu0 %v4043_v41  ;;  %2724 = vmatpush2.bf16.msra.mxu1 %v4046_v42  ;;  %v4091_v41 = vld [vmem:[#allocation8 + $0x4e0] ss:$16 sps:$4 sm:$0xff]  }
  0xe8   :  { %2684 = vmatprep.subr.bf16.mxu0 %v4051_v43  ;;  %2725 = vmatprep.subr.bf16.mxu1 %v4054_v58  ;;  %v4094_v58 = vld [vmem:[#allocation8 + $0x6e0] ss:$16 sps:$4 sm:$0xff]  }
  0xeb   :  { %2685 = vmatpush2.bf16.msra.mxu0 %v4049_v44  ;;  %2726 = vmatpush2.bf16.msra.mxu1 %v4052_v45  ;;  %v4099_v44 = vld [vmem:[#allocation8 + $0x4c4] ss:$16 sps:$4 sm:$0xff]  }
  0xec   :  { %2686 = vmatprep.subr.bf16.mxu0 %v4057_v46  ;;  %2727 = vmatprep.subr.bf16.mxu1 %v4060_v47  ;;  %v4102_v46 = vld [vmem:[#allocation8 + $0x6c4] ss:$16 sps:$4 sm:$0xff]   ;;  %v4097_v47 = vld [vmem:[#allocation8 + $0x4c0] ss:$16 sps:$4 sm:$0xff]  }
  0xef   :  { %2687 = vmatpush2.bf16.msra.mxu0 %v4055_v48  ;;  %2728 = vmatpush2.bf16.msra.mxu1 %v4058_v49  ;;  %v4100_v48 = vld [vmem:[#allocation8 + $0x6c0] ss:$16 sps:$4 sm:$0xff]   ;;  %v4105_v49 = vld [vmem:[#allocation8 + $0x4a4] ss:$16 sps:$4 sm:$0xff]  }
  0xf0   :  { %2688 = vmatprep.subr.bf16.mxu0 %v4063_v50  ;;  %2729 = vmatprep.subr.bf16.mxu1 %v4066_v51  ;;  %v4108_v50 = vld [vmem:[#allocation8 + $0x6a4] ss:$16 sps:$4 sm:$0xff]   ;;  %v4103_v51 = vld [vmem:[#allocation8 + $0x4a0] ss:$16 sps:$4 sm:$0xff]  }
  0xf3   :  { %2689 = vmatpush2.bf16.msra.mxu0 %v4061_v52  ;;  %2730 = vmatpush2.bf16.msra.mxu1 %v4064_v53  ;;  %v4106_v52 = vld [vmem:[#allocation8 + $0x6a0] ss:$16 sps:$4 sm:$0xff]   ;;  %v4111_v53 = vld [vmem:[#allocation8 + $0x484] ss:$16 sps:$4 sm:$0xff]  }
  0xf4   :  { %2690 = vmatprep.subr.bf16.mxu0 %v4069_v54  ;;  %2731 = vmatprep.subr.bf16.mxu1 %v4072_v55  ;;  %v4114_v54 = vld [vmem:[#allocation8 + $0x684] ss:$16 sps:$4 sm:$0xff]   ;;  %v4109_v55 = vld [vmem:[#allocation8 + $0x480] ss:$16 sps:$4 sm:$0xff]  }
  0xf7   :  { %2691 = vmatpush2.bf16.msra.mxu0 %v4067_v56  ;;  %2732 = vmatpush2.bf16.msra.mxu1 %v4070_v57  ;;  %v4112_v56 = vld [vmem:[#allocation8 + $0x680] ss:$16 sps:$4 sm:$0xff]   ;;  %v4117_v57 = vld [vmem:[#allocation8 + $0x464] ss:$16 sps:$4 sm:$0xff]  }
  0xf8   :  { %2692 = vmatprep.subr.bf16.mxu0 %v4075_v59  ;;  %2733 = vmatprep.subr.bf16.mxu1 %v4078_v60  ;;  %v4120_v59 = vld [vmem:[#allocation8 + $0x664] ss:$16 sps:$4 sm:$0xff]   ;;  %v4115_v60 = vld [vmem:[#allocation8 + $0x460] ss:$16 sps:$4 sm:$0xff]  }
  0xfb   :  { %2693 = vmatpush2.bf16.msra.mxu0 %v4073_v61  ;;  %2734 = vmatpush2.bf16.msra.mxu1 %v4076_v62  ;;  %v4118_v61 = vld [vmem:[#allocation8 + $0x660] ss:$16 sps:$4 sm:$0xff]   ;;  %v4123_v62 = vld [vmem:[#allocation8 + $0x444] ss:$16 sps:$4 sm:$0xff]  }
  0xfc   :  { %2694 = vmatprep.subr.bf16.mxu0 %v4081_v63  ;;  %2735 = vmatprep.subr.bf16.mxu1 %v4084_v0  ;;  %v4126_v63 = vld [vmem:[#allocation8 + $0x644] ss:$16 sps:$4 sm:$0xff]   ;;  %v4121_v0 = vld [vmem:[#allocation8 + $0x440] ss:$16 sps:$4 sm:$0xff]  }
  0xff   :  { %2695 = vmatpush2.bf16.msra.mxu0 %v4079_v1  ;;  %2736 = vmatpush2.bf16.msra.mxu1 %v4082_v2  ;;  %v4124_v1 = vld [vmem:[#allocation8 + $0x640] ss:$16 sps:$4 sm:$0xff]   ;;  %v4129_v2 = vld [vmem:[#allocation8 + $0x424] ss:$16 sps:$4 sm:$0xff]  }
 0x100   :  { %2696 = vmatprep.subr.bf16.mxu0 %v4087_v3  ;;  %2737 = vmatprep.subr.bf16.mxu1 %v4090_v4  ;;  %v4132_v3 = vld [vmem:[#allocation8 + $0x624] ss:$16 sps:$4 sm:$0xff]   ;;  %v4127_v4 = vld [vmem:[#allocation8 + $0x420] ss:$16 sps:$4 sm:$0xff]  }
 0x103   :  { %2697 = vmatpush2.bf16.msra.mxu0 %v4085_v5  ;;  %2738 = vmatpush2.bf16.msra.mxu1 %v4088_v6  ;;  %v4130_v5 = vld [vmem:[#allocation8 + $0x620] ss:$16 sps:$4 sm:$0xff]   ;;  %v4135_v6 = vld [vmem:[#allocation8 + $0x404] ss:$16 sps:$4 sm:$0xff]  }
 0x104   :  { %2748 = vmatprep.subr.bf16.mxu0 %v4093_v7  ;;  %2789 = vmatprep.subr.bf16.mxu1 %v4096_v8  ;;  %v4138_v7 = vld [vmem:[#allocation8 + $0x604] ss:$16 sps:$4 sm:$0xff]   ;;  %v4133_v8 = vld [vmem:[#allocation8 + $0x400] ss:$16 sps:$4 sm:$0xff]  }
 0x146   :  { %v946_v20 = vpop.f32.mrf.mxu0  ;;  %v987_v23 = vpop.f32.mrf.mxu1 }
 0x147   :  { %v947_v22 = vadd.f32 %v946_v20, %v235_v17  ;;  %v988_v14 = vadd.f32 %v987_v23, %v243_v18  ;;  %v4141_v17 = vld [vmem:[#allocation8 + $0x5e4] ss:$16 sps:$4 sm:$0xff]   ;;  %v4142_v20 = vld [vmem:[#allocation8 + $0x7e0] ss:$16 sps:$4 sm:$0xff]  }
 0x148   :  { %v948_v24 = vpop.f32.mrf.mxu0  ;;  %v989_v27 = vpop.f32.mrf.mxu1  ;;  %v4144_v18 = vld [vmem:[#allocation8 + $0x7e4] ss:$16 sps:$4 sm:$0xff]   ;;  %v4145_v23 = vld [vmem:[#allocation8 + $0x5c0] ss:$16 sps:$4 sm:$0xff]  }
 0x149   :  { %vm1076_vm0 = vcmp.ge.f32.partialorder %v947_v22, 0.0  ;;  %v1084_v25 = vmul.f32 0.2, %v947_v22  ;;  %v949_v26 = vadd.f32 %v948_v24, %v239_v19  ;;  %vm1078_vm1 = vcmp.ge.f32.partialorder %v988_v14, 0.0  ;;  %v4139_v19 = vld [vmem:[#allocation8 + $0x5e0] ss:$16 sps:$4 sm:$0xff]  }
 0x14a   :  { %v1086_v28 = vmul.f32 0.2, %v988_v14  ;;  %v990_v29 = vadd.f32 %v989_v27, %v247_v21  ;;  %v950_v30 = vpop.f32.mrf.mxu0  ;;  %v991_v32 = vpop.f32.mrf.mxu1  ;;  %v4147_v21 = vld [vmem:[#allocation8 + $0x5c4] ss:$16 sps:$4 sm:$0xff]   ;;  %v4154_v27 = vld [vmem:[#allocation8 + $0x7a0] ss:$16 sps:$4 sm:$0xff]  }
 0x14b   :  { %vm1077_vm2 = vcmp.ge.f32.partialorder %v949_v26, 0.0  ;;  %v1085_v31 = vmul.f32 0.2, %v949_v26  ;;  %v1092_v33 = vsel %vm1076_vm0, %v947_v22, %v1084_v25  ;;  %v4150_v22 = vld [vmem:[#allocation8 + $0x7c4] ss:$16 sps:$4 sm:$0xff]  }
 0x14c   :  { %vm1079_vm3 = vcmp.ge.f32.partialorder %v990_v29, 0.0  ;;  %v1087_v34 = vmul.f32 0.2, %v990_v29  ;;  %v951_v35 = vpop.f32.mrf.mxu0  ;;  %v1094_v36 = vsel %vm1078_vm1, %v988_v14, %v1086_v28  ;;  %v992_v37 = vpop.f32.mrf.mxu1  ;;  %v4700_v42 = vpack.c.bf16 %v1092_v33, %v1092_v33  ;;  %v4148_v14 = vld [vmem:[#allocation8 + $0x7c0] ss:$16 sps:$4 sm:$0xff]  }
 0x14d   :  { %v1093_v38 = vsel %vm1077_vm2, %v949_v26, %v1085_v31  ;;  %v4704_v45 = vpack.c.bf16 %v1094_v36, %v1094_v36  ;;  %v4153_v24 = vld [vmem:[#allocation8 + $0x5a4] ss:$16 sps:$4 sm:$0xff]   ;;  %v4151_v26 = vld [vmem:[#allocation8 + $0x5a0] ss:$16 sps:$4 sm:$0xff]   ;;  %v250_v37 = vsub.s32 4, %v4676_v10 }
 0x14e   :  { %v4698_v39 = vpack.c.bf16 %v1093_v38, %v1093_v38  ;;  %v1095_v40 = vsel %vm1079_vm3, %v990_v29, %v1087_v34  ;;  %v4156_v25 = vld [vmem:[#allocation8 + $0x7a4] ss:$16 sps:$4 sm:$0xff]   ;;  %v4157_v30 = vld [vmem:[#allocation8 + $0x580] ss:$16 sps:$4 sm:$0xff]  }
 0x14f   :  { %v4702_v43 = vpack.c.bf16 %v1095_v40, %v1095_v40  ;;  %v4159_v28 = vld [vmem:[#allocation8 + $0x584] ss:$16 sps:$4 sm:$0xff]   ;;  %v4160_v31 = vld [vmem:[#allocation8 + $0x780] ss:$16 sps:$4 sm:$0xff]   ;;  %v258_v40 = vsub.s32 6, %v4676_v10 }
 0x150   :  { %2698 = vmatprep.mubr.bf16.mxu0 %v4698_v39  ;;  %v4162_v29 = vld [vmem:[#allocation8 + $0x784] ss:$16 sps:$4 sm:$0xff]   ;;  %v4163_v34 = vld [vmem:[#allocation8 + $0x560] ss:$16 sps:$4 sm:$0xff]  }
 0x151   :  { %2739 = vmatprep.mubr.bf16.mxu1 %v4702_v43  ;;  %2699 = vmatmul.mubr.bf16.vlgmr.msra.gmra.mxu0 %v4700_v42  ;;  %v4165_v32 = vld [vmem:[#allocation8 + $0x564] ss:$16 sps:$4 sm:$0xff]   ;;  %v4166_v35 = vld [vmem:[#allocation8 + $0x760] ss:$16 sps:$4 sm:$0xff]  }
 0x152   :  { %2740 = vmatmul.mubr.bf16.vlgmr.msra.gmra.mxu1 %v4704_v45  ;;  %2749 = vmatpush1.bf16.msra.mxu0 %v4091_v41  ;;  %v4168_v33 = vld [vmem:[#allocation8 + $0x764] ss:$16 sps:$4 sm:$0xff]   ;;  %v254_v41 = vsub.s32 5, %v4676_v10 }
 0x153   :  { %2790 = vmatpush1.bf16.msra.mxu1 %v4094_v58  ;;  %2750 = vmatprep.subr.bf16.mxu0 %v4099_v44  ;;  %v4171_v36 = vld [vmem:[#allocation8 + $0x544] ss:$16 sps:$4 sm:$0xff]   ;;  %v4169_v58 = vld [vmem:[#allocation8 + $0x540] ss:$16 sps:$4 sm:$0xff]   ;;  %v262_v44 = vsub.s32 7, %v4676_v10 }
 0x154   :  { %2791 = vmatprep.subr.bf16.mxu1 %v4102_v46  ;;  %v4174_v38 = vld [vmem:[#allocation8 + $0x744] ss:$16 sps:$4 sm:$0xff]   ;;  %v4172_v46 = vld [vmem:[#allocation8 + $0x740] ss:$16 sps:$4 sm:$0xff]  }
 0x156   :  { %2751 = vmatpush1.bf16.msra.mxu0 %v4097_v47  ;;  %v251_v47 = vrot.slane %v4681_v12, %v250_v37  ;;  %v4207_v37 = vld [vmem:[#allocation8 + $0x8c] ss:$16 sps:$4 sm:$0xff]  }
 0x157   :  { %2792 = vmatpush1.bf16.msra.mxu1 %v4100_v48  ;;  %2752 = vmatprep.subr.bf16.mxu0 %v4105_v49  ;;  %v4177_v48 = vld [vmem:[#allocation8 + $0x524] ss:$16 sps:$4 sm:$0xff]   ;;  %v259_v49 = vrot.slane %v4681_v12, %v258_v40  ;;  %v4205_v40 = vld [vmem:[#allocation8 + $0x88] ss:$16 sps:$4 sm:$0xff]  }
 0x158   :  { %2793 = vmatprep.subr.bf16.mxu1 %v4108_v50  ;;  %v4180_v50 = vld [vmem:[#allocation8 + $0x724] ss:$16 sps:$4 sm:$0xff]  }
 0x15a   :  { %2753 = vmatpush1.bf16.msra.mxu0 %v4103_v51  ;;  %v255_v51 = vrot.slane %v4681_v12, %v254_v41  ;;  %v4213_v41 = vld [vmem:[#allocation8 + $0x6c] ss:$16 sps:$4 sm:$0xff]  }
 0x15b   :  { %2794 = vmatpush1.bf16.msra.mxu1 %v4106_v52  ;;  %2754 = vmatprep.subr.bf16.mxu0 %v4111_v53  ;;  %v263_v53 = vrot.slane %v4681_v12, %v262_v44  ;;  %v4214_v44 = vld [vmem:[#allocation8 + $0x268] ss:$16 sps:$4 sm:$0xff]  }
 0x15c   :  { %2795 = vmatprep.subr.bf16.mxu1 %v4114_v54  ;;  %v4175_v54 = vld [vmem:[#allocation8 + $0x520] ss:$16 sps:$4 sm:$0xff]  }
 0x15e   :  { %2755 = vmatpush1.bf16.msra.mxu0 %v4109_v55 }
 0x15f   :  { %2796 = vmatpush1.bf16.msra.mxu1 %v4112_v56  ;;  %2756 = vmatprep.subr.bf16.mxu0 %v4117_v57  ;;  %v4178_v57 = vld [vmem:[#allocation8 + $0x720] ss:$16 sps:$4 sm:$0xff]  }
 0x160   :  { %2797 = vmatprep.subr.bf16.mxu1 %v4120_v59  ;;  %v4183_v59 = vld [vmem:[#allocation8 + $0x504] ss:$16 sps:$4 sm:$0xff]  }
 0x162   :  { %2757 = vmatpush1.bf16.msra.mxu0 %v4115_v60 }
 0x163   :  { %2798 = vmatpush1.bf16.msra.mxu1 %v4118_v61  ;;  %2758 = vmatprep.subr.bf16.mxu0 %v4123_v62  ;;  %v4186_v62 = vld [vmem:[#allocation8 + $0x704] ss:$16 sps:$4 sm:$0xff]  }
 0x164   :  { %2799 = vmatprep.subr.bf16.mxu1 %v4126_v63 }
 0x166   :  { %2759 = vmatpush1.bf16.msra.mxu0 %v4121_v0 }
 0x167   :  { %2800 = vmatpush1.bf16.msra.mxu1 %v4124_v1  ;;  %2760 = vmatprep.subr.bf16.mxu0 %v4129_v2  ;;  %v4181_v2 = vld [vmem:[#allocation8 + $0x500] ss:$16 sps:$4 sm:$0xff]  }
 0x168   :  { %2801 = vmatprep.subr.bf16.mxu1 %v4132_v3 }
 0x16a   :  { %2761 = vmatpush1.bf16.msra.mxu0 %v4127_v4 }
 0x16b   :  { %2802 = vmatpush1.bf16.msra.mxu1 %v4130_v5  ;;  %2762 = vmatprep.subr.bf16.mxu0 %v4135_v6  ;;  %v4184_v5 = vld [vmem:[#allocation8 + $0x700] ss:$16 sps:$4 sm:$0xff]  }
 0x16c   :  { %2803 = vmatprep.subr.bf16.mxu1 %v4138_v7 }
 0x16e   :  { %2763 = vmatpush1.bf16.msra.mxu0 %v4133_v8  ;;  %v4189_v8 = vld [vmem:[#allocation8 + $0xec] ss:$16 sps:$4 sm:$0xff]  }
 0x16f   :  { %2804 = vmatpush1.bf16.msra.mxu1 %v4136_v9  ;;  %2764 = vmatprep.subr.bf16.mxu0 %v4141_v17 }
 0x170   :  { %2805 = vmatprep.subr.bf16.mxu1 %v4144_v18 }
 0x172   :  { %2765 = vmatpush2.bf16.msra.mxu0 %v4139_v19  ;;  %v4192_v19 = vld [vmem:[#allocation8 + $0x2ec] ss:$16 sps:$4 sm:$0xff]  }
 0x173   :  { %2806 = vmatpush2.bf16.msra.mxu1 %v4142_v20  ;;  %2766 = vmatprep.subr.bf16.mxu0 %v4147_v21 }
 0x174   :  { %2807 = vmatprep.subr.bf16.mxu1 %v4150_v22 }
 0x176   :  { %2767 = vmatpush2.bf16.msra.mxu0 %v4145_v23 }
 0x177   :  { %2808 = vmatpush2.bf16.msra.mxu1 %v4148_v14  ;;  %2768 = vmatprep.subr.bf16.mxu0 %v4153_v24  ;;  %v4187_v24 = vld [vmem:[#allocation8 + $0xe8] ss:$16 sps:$4 sm:$0xff]  }
 0x178   :  { %2809 = vmatprep.subr.bf16.mxu1 %v4156_v25 }
 0x17a   :  { %2769 = vmatpush2.bf16.msra.mxu0 %v4151_v26 }
 0x17b   :  { %2810 = vmatpush2.bf16.msra.mxu1 %v4154_v27  ;;  %2770 = vmatprep.subr.bf16.mxu0 %v4159_v28  ;;  %v4190_v27 = vld [vmem:[#allocation8 + $0x2e8] ss:$16 sps:$4 sm:$0xff]  }
 0x17c   :  { %2811 = vmatprep.subr.bf16.mxu1 %v4162_v29  ;;  %v4195_v29 = vld [vmem:[#allocation8 + $0xcc] ss:$16 sps:$4 sm:$0xff]  }
 0x17e   :  { %2771 = vmatpush2.bf16.msra.mxu0 %v4157_v30  ;;  %v4198_v30 = vld [vmem:[#allocation8 + $0x2cc] ss:$16 sps:$4 sm:$0xff]  }
 0x17f   :  { %2812 = vmatpush2.bf16.msra.mxu1 %v4160_v31  ;;  %2772 = vmatprep.subr.bf16.mxu0 %v4165_v32  ;;  %v4193_v31 = vld [vmem:[#allocation8 + $0xc8] ss:$16 sps:$4 sm:$0xff]  }
 0x180   :  { %2813 = vmatprep.subr.bf16.mxu1 %v4168_v33  ;;  %v4196_v32 = vld [vmem:[#allocation8 + $0x2c8] ss:$16 sps:$4 sm:$0xff]   ;;  %v4201_v33 = vld [vmem:[#allocation8 + $0xac] ss:$16 sps:$4 sm:$0xff]  }
 0x182   :  { %2773 = vmatpush2.bf16.msra.mxu0 %v4163_v34  ;;  %v4204_v34 = vld [vmem:[#allocation8 + $0x2ac] ss:$16 sps:$4 sm:$0xff]  }
 0x183   :  { %2814 = vmatpush2.bf16.msra.mxu1 %v4166_v35  ;;  %2774 = vmatprep.subr.bf16.mxu0 %v4171_v36  ;;  %v4199_v35 = vld [vmem:[#allocation8 + $0xa8] ss:$16 sps:$4 sm:$0xff]  }
 0x184   :  { %2815 = vmatprep.subr.bf16.mxu1 %v4174_v38  ;;  %v4202_v36 = vld [vmem:[#allocation8 + $0x2a8] ss:$16 sps:$4 sm:$0xff]   ;;  %v4210_v38 = vld [vmem:[#allocation8 + $0x28c] ss:$16 sps:$4 sm:$0xff]  }
 0x186   :  { %2775 = vmatpush2.bf16.msra.mxu0 %v4169_v58  ;;  %v1028_v52 = vpop.f32.mrf.mxu0  ;;  %v1069_v56 = vpop.f32.mrf.mxu1  ;;  %v4216_v58 = vld [vmem:[#allocation8 + $0x26c] ss:$16 sps:$4 sm:$0xff]  }
 0x187   :  { %2816 = vmatpush2.bf16.msra.mxu1 %v4172_v46  ;;  %v1029_v55 = vadd.f32 %v1028_v52, %v251_v47  ;;  %2776 = vmatprep.subr.bf16.mxu0 %v4177_v48  ;;  %v1070_v60 = vadd.f32 %v1069_v56, %v259_v49  ;;  %v4219_v46 = vld [vmem:[#allocation8 + $0x4c] ss:$16 sps:$4 sm:$0xff]   ;;  %v4217_v48 = vld [vmem:[#allocation8 + $0x48] ss:$16 sps:$4 sm:$0xff]  }
 0x188   :  { %v1030_v61 = vpop.f32.mrf.mxu0  ;;  %2817 = vmatprep.subr.bf16.mxu1 %v4180_v50  ;;  %v1071_v1 = vpop.f32.mrf.mxu1  ;;  %v4222_v47 = vld [vmem:[#allocation8 + $0x24c] ss:$16 sps:$4 sm:$0xff]   ;;  %v4220_v49 = vld [vmem:[#allocation8 + $0x248] ss:$16 sps:$4 sm:$0xff]  }
 0x189   :  { %vm1080_vm4 = vcmp.ge.f32.partialorder %v1029_v55, 0.0  ;;  %v1088_v63 = vmul.f32 0.2, %v1029_v55  ;;  %v1031_v0 = vadd.f32 %v1030_v61, %v255_v51  ;;  %vm1082_vm5 = vcmp.ge.f32.partialorder %v1070_v60, 0.0  ;;  %v4225_v50 = vld [vmem:[#allocation8 + $0x2c] ss:$16 sps:$4 sm:$0xff]  }
 0x18a   :  { %v1090_v3 = vmul.f32 0.2, %v1070_v60  ;;  %v1072_v4 = vadd.f32 %v1071_v1, %v263_v53  ;;  %2777 = vmatpush2.bf16.msra.mxu0 %v4175_v54  ;;  %v1032_v12 = vpop.f32.mrf.mxu0  ;;  %v1073_v7 = vpop.f32.mrf.mxu1  ;;  %v4228_v51 = vld [vmem:[#allocation8 + $0x22c] ss:$16 sps:$4 sm:$0xff]   ;;  %v4223_v52 = vld [vmem:[#allocation8 + $0x28] ss:$16 sps:$4 sm:$0xff]  }
 0x18b   :  { %vm1081_vm6 = vcmp.ge.f32.partialorder %v1031_v0, 0.0  ;;  %v1089_v6 = vmul.f32 0.2, %v1031_v0  ;;  %2818 = vmatpush2.bf16.msra.mxu1 %v4178_v57  ;;  %2778 = vmatprep.subr.bf16.mxu0 %v4183_v59  ;;  %v1096_v9 = vsel %vm1080_vm4, %v1029_v55, %v1088_v63  ;;  %v4226_v53 = vld [vmem:[#allocation8 + $0x228] ss:$16 sps:$4 sm:$0xff]  }
 0x18c   :  { %vm1083_vm7 = vcmp.ge.f32.partialorder %v1072_v4, 0.0  ;;  %v1091_v17 = vmul.f32 0.2, %v1072_v4  ;;  %v1033_v18 = vpop.f32.mrf.mxu0  ;;  %2819 = vmatprep.subr.bf16.mxu1 %v4186_v62  ;;  %v1098_v20 = vsel %vm1082_vm5, %v1070_v60, %v1090_v3  ;;  %v1074_v21 = vpop.f32.mrf.mxu1  ;;  %v4722_v25 = vpack.c.bf16 %v1096_v9, %v1096_v9  ;;  %v4231_v54 = vld [vmem:[#allocation8 + $0xc] ss:$16 sps:$4 sm:$0xff]  }
 0x18d   :  { %v1097_v22 = vsel %vm1081_vm6, %v1031_v0, %v1089_v6  ;;  %v4726_v28 = vpack.c.bf16 %v1098_v20, %v1098_v20  ;;  %v4234_v55 = vld [vmem:[#allocation8 + $0x20c] ss:$16 sps:$4 sm:$0xff]   ;;  %v4229_v56 = vld [vmem:[#allocation8 + $0x8] ss:$16 sps:$4 sm:$0xff]  }
 0x18e   :  { %2779 = vmatpush2.bf16.msra.mxu0 %v4181_v2  ;;  %v4720_v23 = vpack.c.bf16 %v1097_v22, %v1097_v22  ;;  %v1099_v14 = vsel %vm1083_vm7, %v1072_v4, %v1091_v17  ;;  %v4232_v57 = vld [vmem:[#allocation8 + $0x208] ss:$16 sps:$4 sm:$0xff]   ;;  %v4237_v59 = vld [vmem:[#allocation8 + $0x1ec] ss:$16 sps:$4 sm:$0xff]  }
 0x18f   :  { %2820 = vmatpush2.bf16.msra.mxu1 %v4184_v5  ;;  %v4724_v26 = vpack.c.bf16 %v1099_v14, %v1099_v14  ;;  %2830 = vmatprep.subr.bf16.mxu0 %v4189_v8  ;;  %v4240_v60 = vld [vmem:[#allocation8 + $0x3ec] ss:$16 sps:$4 sm:$0xff]   ;;  %v4235_v61 = vld [vmem:[#allocation8 + $0x1e8] ss:$16 sps:$4 sm:$0xff]  }
 0x190   :  { %2780 = vmatprep.mubr.bf16.mxu0 %v4720_v23  ;;  %2871 = vmatprep.subr.bf16.mxu1 %v4192_v19  ;;  %v4238_v62 = vld [vmem:[#allocation8 + $0x3e8] ss:$16 sps:$4 sm:$0xff]   ;;  %v4243_v63 = vld [vmem:[#allocation8 + $0x1cc] ss:$16 sps:$4 sm:$0xff]  }
 0x191   :  { %2821 = vmatprep.mubr.bf16.mxu1 %v4724_v26  ;;  %2781 = vmatmul.mubr.bf16.vlgmr.msra.gmra.mxu0 %v4722_v25  ;;  %v4246_v0 = vld [vmem:[#allocation8 + $0x3cc] ss:$16 sps:$4 sm:$0xff]   ;;  %v4241_v1 = vld [vmem:[#allocation8 + $0x1c8] ss:$16 sps:$4 sm:$0xff]  }
 0x192   :  { %2822 = vmatmul.mubr.bf16.vlgmr.msra.gmra.mxu1 %v4726_v28  ;;  %2831 = vmatpush1.bf16.msra.mxu0 %v4187_v24  ;;  %v4244_v2 = vld [vmem:[#allocation8 + $0x3c8] ss:$16 sps:$4 sm:$0xff]   ;;  %v4249_v3 = vld [vmem:[#allocation8 + $0x1ac] ss:$16 sps:$4 sm:$0xff]  }
 0x193   :  { %2872 = vmatpush1.bf16.msra.mxu1 %v4190_v27  ;;  %2862 = vmatprep.mubr.bf16.mxu0 %v4698_v39  ;;  %v4208_v39 = vld [vmem:[#allocation8 + $0x288] ss:$16 sps:$4 sm:$0xff]   ;;  %v4252_v4 = vld [vmem:[#allocation8 + $0x3ac] ss:$16 sps:$4 sm:$0xff]  }
 0x194   :  { %2903 = vmatprep.mubr.bf16.mxu1 %v4702_v43  ;;  %2832 = vmatprep.subr.bf16.mxu0 %v4195_v29  ;;  %v4211_v43 = vld [vmem:[#allocation8 + $0x68] ss:$16 sps:$4 sm:$0xff]   ;;  %v4255_v6 = vld [vmem:[#allocation8 + $0x18c] ss:$16 sps:$4 sm:$0xff]  }
 0x195   :  { %2873 = vmatprep.subr.bf16.mxu1 %v4198_v30  ;;  %v4247_v12 = vld [vmem:[#allocation8 + $0x1a8] ss:$16 sps:$4 sm:$0xff]   ;;  %v4258_v7 = vld [vmem:[#allocation8 + $0x38c] ss:$16 sps:$4 sm:$0xff]  }
 0x196   :  { %2833 = vmatpush1.bf16.msra.mxu0 %v4193_v31  ;;  %v4250_v5 = vld [vmem:[#allocation8 + $0x3a8] ss:$16 sps:$4 sm:$0xff]   ;;  %v4261_v17 = vld [vmem:[#allocation8 + $0x16c] ss:$16 sps:$4 sm:$0xff]  }
 0x197   :  { %2874 = vmatpush1.bf16.msra.mxu1 %v4196_v32  ;;  %2834 = vmatprep.subr.bf16.mxu0 %v4201_v33  ;;  %v4253_v8 = vld [vmem:[#allocation8 + $0x188] ss:$16 sps:$4 sm:$0xff]   ;;  %v4264_v18 = vld [vmem:[#allocation8 + $0x36c] ss:$16 sps:$4 sm:$0xff]  }
 0x198   :  { %2875 = vmatprep.subr.bf16.mxu1 %v4204_v34  ;;  %v4256_v9 = vld [vmem:[#allocation8 + $0x388] ss:$16 sps:$4 sm:$0xff]   ;;  %v4267_v21 = vld [vmem:[#allocation8 + $0x14c] ss:$16 sps:$4 sm:$0xff]  }
 0x199   :  { %v4259_v19 = vld [vmem:[#allocation8 + $0x168] ss:$16 sps:$4 sm:$0xff]   ;;  %v4270_v22 = vld [vmem:[#allocation8 + $0x34c] ss:$16 sps:$4 sm:$0xff]  }
 0x19a   :  { %2835 = vmatpush1.bf16.msra.mxu0 %v4199_v35  ;;  %v4262_v20 = vld [vmem:[#allocation8 + $0x368] ss:$16 sps:$4 sm:$0xff]   ;;  %v4273_v27 = vld [vmem:[#allocation8 + $0x12c] ss:$16 sps:$4 sm:$0xff]  }
 0x19b   :  { %2876 = vmatpush1.bf16.msra.mxu1 %v4202_v36  ;;  %2836 = vmatprep.subr.bf16.mxu0 %v4207_v37  ;;  %v4265_v14 = vld [vmem:[#allocation8 + $0x148] ss:$16 sps:$4 sm:$0xff]   ;;  %v4276_v29 = vld [vmem:[#allocation8 + $0x32c] ss:$16 sps:$4 sm:$0xff]  }
 0x19c   :  { %2877 = vmatprep.subr.bf16.mxu1 %v4210_v38  ;;  %v4268_v24 = vld [vmem:[#allocation8 + $0x348] ss:$16 sps:$4 sm:$0xff]   ;;  %v4279_v32 = vld [vmem:[#allocation8 + $0x10c] ss:$16 sps:$4 sm:$0xff]  }
 0x19d   :  { %v4271_v30 = vld [vmem:[#allocation8 + $0x128] ss:$16 sps:$4 sm:$0xff]   ;;  %v4282_v33 = vld [vmem:[#allocation8 + $0x30c] ss:$16 sps:$4 sm:$0xff]  }
 0x19e   :  { %2837 = vmatpush1.bf16.msra.mxu0 %v4205_v40  ;;  %v4274_v31 = vld [vmem:[#allocation8 + $0x328] ss:$16 sps:$4 sm:$0xff]   ;;  %v4285_v36 = vld [vmem:[#allocation8 + $0x4ec] ss:$16 sps:$4 sm:$0xff]  }
 0x19f   :  { %2878 = vmatpush1.bf16.msra.mxu1 %v4208_v39  ;;  %2838 = vmatprep.subr.bf16.mxu0 %v4213_v41  ;;  %v4277_v34 = vld [vmem:[#allocation8 + $0x108] ss:$16 sps:$4 sm:$0xff]   ;;  %v4288_v37 = vld [vmem:[#allocation8 + $0x6ec] ss:$16 sps:$4 sm:$0xff]  }
 0x1a0   :  { %2879 = vmatprep.subr.bf16.mxu1 %v4216_v58  ;;  %v4280_v35 = vld [vmem:[#allocation8 + $0x308] ss:$16 sps:$4 sm:$0xff]   ;;  %v4291_v39 = vld [vmem:[#allocation8 + $0x4cc] ss:$16 sps:$4 sm:$0xff]  }
 0x1a1   :  { %v4283_v38 = vld [vmem:[#allocation8 + $0x4e8] ss:$16 sps:$4 sm:$0xff]   ;;  %v4294_v41 = vld [vmem:[#allocation8 + $0x6cc] ss:$16 sps:$4 sm:$0xff]  }
 0x1a2   :  { %2839 = vmatpush1.bf16.msra.mxu0 %v4211_v43  ;;  %v4286_v40 = vld [vmem:[#allocation8 + $0x6e8] ss:$16 sps:$4 sm:$0xff]  }
 0x1a3   :  { %2880 = vmatpush1.bf16.msra.mxu1 %v4214_v44  ;;  %2840 = vmatprep.subr.bf16.mxu0 %v4219_v46  ;;  %v4289_v58 = vld [vmem:[#allocation8 + $0x4c8] ss:$16 sps:$4 sm:$0xff]   ;;  %v4297_v44 = vld [vmem:[#allocation8 + $0x4ac] ss:$16 sps:$4 sm:$0xff]  }
 0x1a4   :  { %2881 = vmatprep.subr.bf16.mxu1 %v4222_v47  ;;  %v4292_v43 = vld [vmem:[#allocation8 + $0x6c8] ss:$16 sps:$4 sm:$0xff]   ;;  %v4300_v46 = vld [vmem:[#allocation8 + $0x6ac] ss:$16 sps:$4 sm:$0xff]  }
 0x1a5   :  { %v4295_v47 = vld [vmem:[#allocation8 + $0x4a8] ss:$16 sps:$4 sm:$0xff]  }
 0x1a6   :  { %2841 = vmatpush1.bf16.msra.mxu0 %v4217_v48  ;;  %v4303_v48 = vld [vmem:[#allocation8 + $0x48c] ss:$16 sps:$4 sm:$0xff]  }
 0x1a7   :  { %2882 = vmatpush1.bf16.msra.mxu1 %v4220_v49  ;;  %2842 = vmatprep.subr.bf16.mxu0 %v4225_v50  ;;  %v4301_v49 = vld [vmem:[#allocation8 + $0x488] ss:$16 sps:$4 sm:$0xff]   ;;  %v4309_v50 = vld [vmem:[#allocation8 + $0x46c] ss:$16 sps:$4 sm:$0xff]  }
 0x1a8   :  { %2883 = vmatprep.subr.bf16.mxu1 %v4228_v51  ;;  %v4312_v51 = vld [vmem:[#allocation8 + $0x66c] ss:$16 sps:$4 sm:$0xff]  }
 0x1aa   :  { %2843 = vmatpush1.bf16.msra.mxu0 %v4223_v52  ;;  %v4310_v52 = vld [vmem:[#allocation8 + $0x668] ss:$16 sps:$4 sm:$0xff]  }
 0x1ab   :  { %2884 = vmatpush1.bf16.msra.mxu1 %v4226_v53  ;;  %2844 = vmatprep.subr.bf16.mxu0 %v4231_v54  ;;  %v4315_v53 = vld [vmem:[#allocation8 + $0x44c] ss:$16 sps:$4 sm:$0xff]  }
 0x1ac   :  { %2885 = vmatprep.subr.bf16.mxu1 %v4234_v55  ;;  %v4318_v54 = vld [vmem:[#allocation8 + $0x64c] ss:$16 sps:$4 sm:$0xff]   ;;  %v4313_v55 = vld [vmem:[#allocation8 + $0x448] ss:$16 sps:$4 sm:$0xff]  }
 0x1ae   :  { %2845 = vmatpush1.bf16.msra.mxu0 %v4229_v56  ;;  %v4316_v56 = vld [vmem:[#allocation8 + $0x648] ss:$16 sps:$4 sm:$0xff]  }
 0x1af   :  { %2886 = vmatpush1.bf16.msra.mxu1 %v4232_v57  ;;  %2846 = vmatprep.subr.bf16.mxu0 %v4237_v59  ;;  %v4321_v57 = vld [vmem:[#allocation8 + $0x42c] ss:$16 sps:$4 sm:$0xff]  }
 0x1b0   :  { %2887 = vmatprep.subr.bf16.mxu1 %v4240_v60  ;;  %v4324_v59 = vld [vmem:[#allocation8 + $0x62c] ss:$16 sps:$4 sm:$0xff]   ;;  %v4319_v60 = vld [vmem:[#allocation8 + $0x428] ss:$16 sps:$4 sm:$0xff]  }
 0x1b2   :  { %2847 = vmatpush2.bf16.msra.mxu0 %v4235_v61  ;;  %v4322_v61 = vld [vmem:[#allocation8 + $0x628] ss:$16 sps:$4 sm:$0xff]  }
 0x1b3   :  { %2888 = vmatpush2.bf16.msra.mxu1 %v4238_v62  ;;  %2848 = vmatprep.subr.bf16.mxu0 %v4243_v63  ;;  %v4327_v62 = vld [vmem:[#allocation8 + $0x40c] ss:$16 sps:$4 sm:$0xff]  }
 0x1b4   :  { %2889 = vmatprep.subr.bf16.mxu1 %v4246_v0  ;;  %v4330_v63 = vld [vmem:[#allocation8 + $0x60c] ss:$16 sps:$4 sm:$0xff]   ;;  %v4325_v0 = vld [vmem:[#allocation8 + $0x408] ss:$16 sps:$4 sm:$0xff]  }
 0x1b6   :  { %2849 = vmatpush2.bf16.msra.mxu0 %v4241_v1  ;;  %v4328_v1 = vld [vmem:[#allocation8 + $0x608] ss:$16 sps:$4 sm:$0xff]  }
 0x1b7   :  { %2890 = vmatpush2.bf16.msra.mxu1 %v4244_v2  ;;  %2850 = vmatprep.subr.bf16.mxu0 %v4249_v3  ;;  %v4333_v2 = vld [vmem:[#allocation8 + $0x5ec] ss:$16 sps:$4 sm:$0xff]  }
 0x1b8   :  { %2891 = vmatprep.subr.bf16.mxu1 %v4252_v4  ;;  %v4336_v3 = vld [vmem:[#allocation8 + $0x7ec] ss:$16 sps:$4 sm:$0xff]   ;;  %v4331_v4 = vld [vmem:[#allocation8 + $0x5e8] ss:$16 sps:$4 sm:$0xff]  }
 0x1ba   :  { %2851 = vmatpush2.bf16.msra.mxu0 %v4247_v12  ;;  %v4334_v12 = vld [vmem:[#allocation8 + $0x7e8] ss:$16 sps:$4 sm:$0xff]  }
 0x1bb   :  { %2892 = vmatpush2.bf16.msra.mxu1 %v4250_v5  ;;  %2852 = vmatprep.subr.bf16.mxu0 %v4255_v6  ;;  %v4339_v5 = vld [vmem:[#allocation8 + $0x5cc] ss:$16 sps:$4 sm:$0xff]  }
 0x1bc   :  { %2893 = vmatprep.subr.bf16.mxu1 %v4258_v7  ;;  %v4342_v6 = vld [vmem:[#allocation8 + $0x7cc] ss:$16 sps:$4 sm:$0xff]   ;;  %v4337_v7 = vld [vmem:[#allocation8 + $0x5c8] ss:$16 sps:$4 sm:$0xff]  }
 0x1be   :  { %2853 = vmatpush2.bf16.msra.mxu0 %v4253_v8  ;;  %v4340_v8 = vld [vmem:[#allocation8 + $0x7c8] ss:$16 sps:$4 sm:$0xff]  }
 0x1bf   :  { %2894 = vmatpush2.bf16.msra.mxu1 %v4256_v9  ;;  %2854 = vmatprep.subr.bf16.mxu0 %v4261_v17  ;;  %v4345_v9 = vld [vmem:[#allocation8 + $0x5ac] ss:$16 sps:$4 sm:$0xff]  }
 0x1c0   :  { %2895 = vmatprep.subr.bf16.mxu1 %v4264_v18  ;;  %v4348_v17 = vld [vmem:[#allocation8 + $0x7ac] ss:$16 sps:$4 sm:$0xff]   ;;  %v4343_v18 = vld [vmem:[#allocation8 + $0x5a8] ss:$16 sps:$4 sm:$0xff]  }
 0x1c2   :  { %2855 = vmatpush2.bf16.msra.mxu0 %v4259_v19  ;;  %v4346_v19 = vld [vmem:[#allocation8 + $0x7a8] ss:$16 sps:$4 sm:$0xff]  }
 0x1c3   :  { %2896 = vmatpush2.bf16.msra.mxu1 %v4262_v20  ;;  %2856 = vmatprep.subr.bf16.mxu0 %v4267_v21  ;;  %v4351_v20 = vld [vmem:[#allocation8 + $0x58c] ss:$16 sps:$4 sm:$0xff]  }
 0x1c4   :  { %2897 = vmatprep.subr.bf16.mxu1 %v4270_v22  ;;  %v4354_v21 = vld [vmem:[#allocation8 + $0x78c] ss:$16 sps:$4 sm:$0xff]   ;;  %v4349_v22 = vld [vmem:[#allocation8 + $0x588] ss:$16 sps:$4 sm:$0xff]  }
 0x1c6   :  { %2857 = vmatpush2.bf16.msra.mxu0 %v4265_v14  ;;  %v4352_v14 = vld [vmem:[#allocation8 + $0x788] ss:$16 sps:$4 sm:$0xff]  }
 0x1c7   :  { %2898 = vmatpush2.bf16.msra.mxu1 %v4268_v24  ;;  %2858 = vmatprep.subr.bf16.mxu0 %v4273_v27  ;;  %v4357_v24 = vld [vmem:[#allocation8 + $0x56c] ss:$16 sps:$4 sm:$0xff]  }
 0x1c8   :  { %2899 = vmatprep.subr.bf16.mxu1 %v4276_v29  ;;  %v4360_v27 = vld [vmem:[#allocation8 + $0x76c] ss:$16 sps:$4 sm:$0xff]   ;;  %v4355_v29 = vld [vmem:[#allocation8 + $0x568] ss:$16 sps:$4 sm:$0xff]  }
 0x1ca   :  { %2859 = vmatpush2.bf16.msra.mxu0 %v4271_v30  ;;  %v4358_v30 = vld [vmem:[#allocation8 + $0x768] ss:$16 sps:$4 sm:$0xff]  }
 0x1cb   :  { %2900 = vmatpush2.bf16.msra.mxu1 %v4274_v31  ;;  %2860 = vmatprep.subr.bf16.mxu0 %v4279_v32  ;;  %v4363_v31 = vld [vmem:[#allocation8 + $0x54c] ss:$16 sps:$4 sm:$0xff]  }
 0x1cc   :  { %2901 = vmatprep.subr.bf16.mxu1 %v4282_v33  ;;  %v4366_v32 = vld [vmem:[#allocation8 + $0x74c] ss:$16 sps:$4 sm:$0xff]   ;;  %v4361_v33 = vld [vmem:[#allocation8 + $0x548] ss:$16 sps:$4 sm:$0xff]  }
 0x1ce   :  { %2861 = vmatpush2.bf16.msra.mxu0 %v4277_v34  ;;  %v4364_v34 = vld [vmem:[#allocation8 + $0x748] ss:$16 sps:$4 sm:$0xff]  }
 0x1cf   :  { %2902 = vmatpush2.bf16.msra.mxu1 %v4280_v35  ;;  %2912 = vmatprep.subr.bf16.mxu0 %v4285_v36  ;;  %v4369_v35 = vld [vmem:[#allocation8 + $0x52c] ss:$16 sps:$4 sm:$0xff]  }
 0x1d0   :  { %2953 = vmatprep.subr.bf16.mxu1 %v4288_v37  ;;  %v4372_v36 = vld [vmem:[#allocation8 + $0x72c] ss:$16 sps:$4 sm:$0xff]   ;;  %v4367_v37 = vld [vmem:[#allocation8 + $0x528] ss:$16 sps:$4 sm:$0xff]  }
 0x1d1   :  { %2863 = vmatmul.mubr.bf16.vlgmr.msra.gmra.mxu0 %v4700_v42  ;;  %v4298_v42 = vld [vmem:[#allocation8 + $0x6a8] ss:$16 sps:$4 sm:$0xff]  }
 0x1d2   :  { %2904 = vmatmul.mubr.bf16.vlgmr.msra.gmra.mxu1 %v4704_v45  ;;  %2913 = vmatpush1.bf16.msra.mxu0 %v4283_v38  ;;  %v4306_v45 = vld [vmem:[#allocation8 + $0x68c] ss:$16 sps:$4 sm:$0xff]   ;;  %v4370_v38 = vld [vmem:[#allocation8 + $0x728] ss:$16 sps:$4 sm:$0xff]  }
 0x1d3   :  { %2944 = vmatprep.mubr.bf16.mxu0 %v4720_v23  ;;  %2954 = vmatpush1.bf16.msra.mxu1 %v4286_v40  ;;  %v4304_v23 = vld [vmem:[#allocation8 + $0x688] ss:$16 sps:$4 sm:$0xff]   ;;  %v4375_v40 = vld [vmem:[#allocation8 + $0x50c] ss:$16 sps:$4 sm:$0xff]  }
 0x1d4   :  { %2985 = vmatprep.mubr.bf16.mxu1 %v4724_v26  ;;  %2914 = vmatprep.subr.bf16.mxu0 %v4291_v39  ;;  %v4307_v26 = vld [vmem:[#allocation8 + $0x468] ss:$16 sps:$4 sm:$0xff]   ;;  %v4378_v39 = vld [vmem:[#allocation8 + $0x70c] ss:$16 sps:$4 sm:$0xff]  }
 0x1d5   :  { %2955 = vmatprep.subr.bf16.mxu1 %v4294_v41  ;;  %v4373_v41 = vld [vmem:[#allocation8 + $0x508] ss:$16 sps:$4 sm:$0xff]  }
 0x1d6   :  { %2915 = vmatpush1.bf16.msra.mxu0 %v4289_v58  ;;  %v4376_v58 = vld [vmem:[#allocation8 + $0x708] ss:$16 sps:$4 sm:$0xff]  }
 0x1d7   :  { %2956 = vmatpush1.bf16.msra.mxu1 %v4292_v43  ;;  %2916 = vmatprep.subr.bf16.mxu0 %v4297_v44  ;;  %v4381_v43 = vld [vmem:[#allocation10 + $0x74] ss:$8 sps:$4 sm:$0xff]   ;;  %v4379_v44 = vld [vmem:[#allocation10 + $0x70] ss:$8 sps:$4 sm:$0xff]  }
 0x1d8   :  { %2957 = vmatprep.subr.bf16.mxu1 %v4300_v46  ;;  %v4384_v46 = vld [vmem:[#allocation10 + $0x64] ss:$8 sps:$4 sm:$0xff]  }
 0x1da   :  { %2917 = vmatpush1.bf16.msra.mxu0 %v4295_v47 }
 0x1db   :  { %2958 = vmatpush1.bf16.msra.mxu1 %v4298_v42  ;;  %2918 = vmatprep.subr.bf16.mxu0 %v4303_v48  ;;  %v4382_v48 = vld [vmem:[#allocation10 + $0x60] ss:$8 sps:$4 sm:$0xff]  }
 0x1dc   :  { %2959 = vmatprep.subr.bf16.mxu1 %v4306_v45 }
 0x1de   :  { %2919 = vmatpush1.bf16.msra.mxu0 %v4301_v49  ;;  %v4387_v49 = vld [vmem:[#allocation10 + $0x54] ss:$8 sps:$4 sm:$0xff]  }
 0x1df   :  { %2960 = vmatpush1.bf16.msra.mxu1 %v4304_v23  ;;  %2920 = vmatprep.subr.bf16.mxu0 %v4309_v50 }
 0x1e0   :  { %2961 = vmatprep.subr.bf16.mxu1 %v4312_v51 }
 0x1e2   :  { %2921 = vmatpush1.bf16.msra.mxu0 %v4307_v26  ;;  %v4385_v26 = vld [vmem:[#allocation10 + $0x50] ss:$8 sps:$4 sm:$0xff]  }
 0x1e3   :  { %2962 = vmatpush1.bf16.msra.mxu1 %v4310_v52  ;;  %2922 = vmatprep.subr.bf16.mxu0 %v4315_v53 }
 0x1e4   :  { %2963 = vmatprep.subr.bf16.mxu1 %v4318_v54  ;;  %v4427_v54 = vld [vmem:[#allocation10 + $0x170] ss:$8 sps:$4 sm:$0xff]  }
 0x1e6   :  { %2923 = vmatpush1.bf16.msra.mxu0 %v4313_v55  ;;  %v4432_v55 = vld [vmem:[#allocation10 + $0x164] ss:$8 sps:$4 sm:$0xff]  }
 0x1e7   :  { %2964 = vmatpush1.bf16.msra.mxu1 %v4316_v56  ;;  %2924 = vmatprep.subr.bf16.mxu0 %v4321_v57  ;;  %v4388_v56 = vld [vmem:[#allocation10 + $0x40] ss:$8 sps:$4 sm:$0xff]   ;;  %v4393_v57 = vld [vmem:[#allocation10 + $0x34] ss:$8 sps:$4 sm:$0xff]  }
 0x1e8   :  { %2965 = vmatprep.subr.bf16.mxu1 %v4324_v59  ;;  %v4430_v59 = vld [vmem:[#allocation10 + $0x160] ss:$8 sps:$4 sm:$0xff]  }
 0x1ea   :  { %2925 = vmatpush1.bf16.msra.mxu0 %v4319_v60  ;;  %v4435_v60 = vld [vmem:[#allocation10 + $0x154] ss:$8 sps:$4 sm:$0xff]  }
 0x1eb   :  { %2966 = vmatpush1.bf16.msra.mxu1 %v4322_v61  ;;  %2926 = vmatprep.subr.bf16.mxu0 %v4327_v62  ;;  %v4391_v61 = vld [vmem:[#allocation10 + $0x30] ss:$8 sps:$4 sm:$0xff]   ;;  %v4396_v62 = vld [vmem:[#allocation10 + $0x24] ss:$8 sps:$4 sm:$0xff]  }
 0x1ec   :  { %2967 = vmatprep.subr.bf16.mxu1 %v4330_v63  ;;  %v4433_v63 = vld [vmem:[#allocation10 + $0x150] ss:$8 sps:$4 sm:$0xff]  }
 0x1ee   :  { %2927 = vmatpush1.bf16.msra.mxu0 %v4325_v0  ;;  %v4438_v0 = vld [vmem:[#allocation10 + $0x144] ss:$8 sps:$4 sm:$0xff]  }
 0x1ef   :  { %2968 = vmatpush1.bf16.msra.mxu1 %v4328_v1  ;;  %2928 = vmatprep.subr.bf16.mxu0 %v4333_v2  ;;  %v4394_v1 = vld [vmem:[#allocation10 + $0x20] ss:$8 sps:$4 sm:$0xff]   ;;  %v4399_v2 = vld [vmem:[#allocation10 + $0x14] ss:$8 sps:$4 sm:$0xff]  }
 0x1f0   :  { %2969 = vmatprep.subr.bf16.mxu1 %v4336_v3  ;;  %v4436_v3 = vld [vmem:[#allocation10 + $0x140] ss:$8 sps:$4 sm:$0xff]  }
 0x1f2   :  { %2929 = vmatpush2.bf16.msra.mxu0 %v4331_v4  ;;  %v4441_v4 = vld [vmem:[#allocation10 + $0x134] ss:$8 sps:$4 sm:$0xff]  }
 0x1f3   :  { %2970 = vmatpush2.bf16.msra.mxu1 %v4334_v12  ;;  %2930 = vmatprep.subr.bf16.mxu0 %v4339_v5  ;;  %v4397_v12 = vld [vmem:[#allocation10 + $0x10] ss:$8 sps:$4 sm:$0xff]   ;;  %v4402_v5 = vld [vmem:[#allocation10 + $0x4] ss:$8 sps:$4 sm:$0xff]  }
 0x1f4   :  { %2971 = vmatprep.subr.bf16.mxu1 %v4342_v6  ;;  %v4439_v6 = vld [vmem:[#allocation10 + $0x130] ss:$8 sps:$4 sm:$0xff]  }
 0x1f6   :  { %2931 = vmatpush2.bf16.msra.mxu0 %v4337_v7  ;;  %v4444_v7 = vld [vmem:[#allocation10 + $0x124] ss:$8 sps:$4 sm:$0xff]  }
 0x1f7   :  { %2972 = vmatpush2.bf16.msra.mxu1 %v4340_v8  ;;  %2932 = vmatprep.subr.bf16.mxu0 %v4345_v9  ;;  %v4400_v8 = vld [vmem:[#allocation10] ss:$8 sps:$4 sm:$0xff]   ;;  %v4405_v9 = vld [vmem:[#allocation10 + $0xf4] ss:$8 sps:$4 sm:$0xff]  }
 0x1f8   :  { %2973 = vmatprep.subr.bf16.mxu1 %v4348_v17  ;;  %v4442_v17 = vld [vmem:[#allocation10 + $0x120] ss:$8 sps:$4 sm:$0xff]  }
 0x1fa   :  { %2933 = vmatpush2.bf16.msra.mxu0 %v4343_v18  ;;  %v4447_v18 = vld [vmem:[#allocation10 + $0x114] ss:$8 sps:$4 sm:$0xff]  }
 0x1fb   :  { %2974 = vmatpush2.bf16.msra.mxu1 %v4346_v19  ;;  %2934 = vmatprep.subr.bf16.mxu0 %v4351_v20  ;;  %v4403_v19 = vld [vmem:[#allocation10 + $0xf0] ss:$8 sps:$4 sm:$0xff]   ;;  %v4408_v20 = vld [vmem:[#allocation10 + $0xe4] ss:$8 sps:$4 sm:$0xff]  }
 0x1fc   :  { %2975 = vmatprep.subr.bf16.mxu1 %v4354_v21  ;;  %v4445_v21 = vld [vmem:[#allocation10 + $0x110] ss:$8 sps:$4 sm:$0xff]  }
 0x1fe   :  { %2935 = vmatpush2.bf16.msra.mxu0 %v4349_v22  ;;  %v4450_v22 = vld [vmem:[#allocation10 + $0x104] ss:$8 sps:$4 sm:$0xff]  }
 0x1ff   :  { %2976 = vmatpush2.bf16.msra.mxu1 %v4352_v14  ;;  %2936 = vmatprep.subr.bf16.mxu0 %v4357_v24  ;;  %v4406_v14 = vld [vmem:[#allocation10 + $0xe0] ss:$8 sps:$4 sm:$0xff]   ;;  %v4411_v24 = vld [vmem:[#allocation10 + $0xd4] ss:$8 sps:$4 sm:$0xff]  }
 0x200   :  { %2977 = vmatprep.subr.bf16.mxu1 %v4360_v27  ;;  %v4448_v27 = vld [vmem:[#allocation10 + $0x100] ss:$8 sps:$4 sm:$0xff]  }
 0x202   :  { %2937 = vmatpush2.bf16.msra.mxu0 %v4355_v29  ;;  %v4453_v29 = vld [vmem:[#allocation10 + $0x1f4] ss:$8 sps:$4 sm:$0xff]  }
 0x203   :  { %2978 = vmatpush2.bf16.msra.mxu1 %v4358_v30  ;;  %2938 = vmatprep.subr.bf16.mxu0 %v4363_v31  ;;  %v4409_v30 = vld [vmem:[#allocation10 + $0xd0] ss:$8 sps:$4 sm:$0xff]   ;;  %v4414_v31 = vld [vmem:[#allocation10 + $0xc4] ss:$8 sps:$4 sm:$0xff]  }
 0x204   :  { %2979 = vmatprep.subr.bf16.mxu1 %v4366_v32  ;;  %v4451_v32 = vld [vmem:[#allocation10 + $0x1f0] ss:$8 sps:$4 sm:$0xff]  }
 0x206   :  { %2939 = vmatpush2.bf16.msra.mxu0 %v4361_v33  ;;  %v4456_v33 = vld [vmem:[#allocation10 + $0x1e4] ss:$8 sps:$4 sm:$0xff]  }
 0x207   :  { %2980 = vmatpush2.bf16.msra.mxu1 %v4364_v34  ;;  %2940 = vmatprep.subr.bf16.mxu0 %v4369_v35  ;;  %v4412_v34 = vld [vmem:[#allocation10 + $0xc0] ss:$8 sps:$4 sm:$0xff]   ;;  %v4417_v35 = vld [vmem:[#allocation10 + $0xb4] ss:$8 sps:$4 sm:$0xff]  }
 0x208   :  { %2981 = vmatprep.subr.bf16.mxu1 %v4372_v36  ;;  %v4454_v36 = vld [vmem:[#allocation10 + $0x1e0] ss:$8 sps:$4 sm:$0xff]  }
 0x20a   :  { %2941 = vmatpush2.bf16.msra.mxu0 %v4367_v37  ;;  %v4459_v37 = vld [vmem:[#allocation10 + $0x1d4] ss:$8 sps:$4 sm:$0xff]  }
 0x20b   :  { %2982 = vmatpush2.bf16.msra.mxu1 %v4370_v38  ;;  %2942 = vmatprep.subr.bf16.mxu0 %v4375_v40  ;;  %v4415_v38 = vld [vmem:[#allocation10 + $0xb0] ss:$8 sps:$4 sm:$0xff]   ;;  %v4420_v40 = vld [vmem:[#allocation10 + $0xa4] ss:$8 sps:$4 sm:$0xff]  }
 0x20c   :  { %2983 = vmatprep.subr.bf16.mxu1 %v4378_v39  ;;  %v4457_v39 = vld [vmem:[#allocation10 + $0x1d0] ss:$8 sps:$4 sm:$0xff]  }
 0x20e   :  { %2943 = vmatpush2.bf16.msra.mxu0 %v4373_v41  ;;  %v4462_v41 = vld [vmem:[#allocation10 + $0x1c4] ss:$8 sps:$4 sm:$0xff]  }
 0x20f   :  { %2984 = vmatpush2.bf16.msra.mxu1 %v4376_v58  ;;  %3406 = vmatprep.subr.bf16.mxu0 %v4381_v43  ;;  %v4418_v58 = vld [vmem:[#allocation10 + $0xa0] ss:$8 sps:$4 sm:$0xff]   ;;  %v4423_v43 = vld [vmem:[#allocation10 + $0x94] ss:$8 sps:$4 sm:$0xff]  }
 0x211   :  { %2945 = vmatmul.mubr.bf16.vlgmr.msra.gmra.mxu0 %v4722_v25  ;;  %v4739_v47 = vpop.f32.mrf.mxu0  ;;  %v4390_v25 = vld [vmem:[#allocation10 + $0x44] ss:$8 sps:$4 sm:$0xff]  }
 0x212   :  { %2986 = vmatmul.mubr.bf16.vlgmr.msra.gmra.mxu1 %v4726_v28  ;;  %v4742_v42 = vpop.f32.mrf.mxu1  ;;  %3407 = vmatpush1.bf16.msra.mxu0 %v4379_v44  ;;  %v4429_v28 = vld [vmem:[#allocation10 + $0x174] ss:$8 sps:$4 sm:$0xff]   ;;  %v4460_v44 = vld [vmem:[#allocation10 + $0x1c0] ss:$8 sps:$4 sm:$0xff]  }
 0x213   :  { %v4744_v45 = vpop.f32.mrf.mxu0  ;;  %3408 = vmatprep.subr.bf16.mxu0 %v4384_v46  ;;  %3447 = vmatprep.subr.bf16.mxu1 %v4429_v28  ;;  %v4465_v46 = vld [vmem:[#allocation10 + $0x1b4] ss:$8 sps:$4 sm:$0xff]  }
 0x214   :  { %v4746_v23 = vpop.f32.mrf.mxu1  ;;  %3448 = vmatpush1.bf16.msra.mxu1 %v4427_v54 }
 0x215   :  { %v2704_v50 = vpop.f32.mrf.mxu0  ;;  %3449 = vmatprep.subr.bf16.mxu1 %v4432_v55 }
 0x216   :  { %v2745_v51 = vpop.f32.mrf.mxu1  ;;  %3409 = vmatpush1.bf16.msra.mxu0 %v4382_v48  ;;  %v1364_v48 = vld [vmem:[%s4778_s4] sm:$0xf] }
 0x217   :  { %v2705_v52 = vpop.f32.mrf.mxu0  ;;  %3410 = vmatprep.subr.bf16.mxu0 %v4387_v49  ;;  %v4421_v49 = vld [vmem:[#allocation10 + $0x90] ss:$8 sps:$4 sm:$0xff]   ;;  %v4426_v50 = vld [vmem:[#allocation10 + $0x84] ss:$8 sps:$4 sm:$0xff]  }
 0x218   :  { %v2746_v53 = vpop.f32.mrf.mxu1  ;;  %3450 = vmatpush1.bf16.msra.mxu1 %v4430_v59  ;;  %v4463_v51 = vld [vmem:[#allocation10 + $0x1b0] ss:$8 sps:$4 sm:$0xff]   ;;  %v1373_v52 = vrot.slane %v1364_v48, %v4685_v15 }
 0x219   :  { %3451 = vmatprep.subr.bf16.mxu1 %v4435_v60  ;;  %v4468_v60 = vld [vmem:[#allocation10 + $0x1a4] ss:$8 sps:$4 sm:$0xff]  }
 0x21a   :  { %3411 = vmatpush1.bf16.msra.mxu0 %v4385_v26  ;;  %v1369_v26 = vrot.slane %v1364_v48, %v4679_v11  ;;  %v2703_v54 = vadd.f32 %v4744_v45, %v1373_v52 }
 0x21b   :  { %3412 = vmatprep.subr.bf16.mxu0 %v4390_v25  ;;  %v4424_v25 = vld [vmem:[#allocation10 + $0x80] ss:$8 sps:$4 sm:$0xff]  }
 0x21c   :  { %3452 = vmatpush1.bf16.msra.mxu1 %v4433_v63  ;;  %v2701_v53 = vadd.f32 %v4739_v47, %v1369_v26 }
 0x21d   :  { %3453 = vmatprep.subr.bf16.mxu1 %v4438_v0 }
 0x21e   :  { %3413 = vmatpush1.bf16.msra.mxu0 %v4388_v56  ;;  %v2742_v28 = vadd.f32 %v4742_v42, %v2701_v53  ;;  %v2744_v56 = vadd.f32 %v4746_v23, %v2703_v54 }
 0x21f   :  { %3414 = vmatprep.subr.bf16.mxu0 %v4393_v57 }
 0x220   :  { %3454 = vmatpush1.bf16.msra.mxu1 %v4436_v3 }
 0x221   :  { %3455 = vmatprep.subr.bf16.mxu1 %v4441_v4  ;;  %v4471_v4 = vld [vmem:[#allocation10 + $0x194] ss:$8 sps:$4 sm:$0xff]  }
 0x222   :  { %3415 = vmatpush1.bf16.msra.mxu0 %v4391_v61 }
 0x223   :  { %3416 = vmatprep.subr.bf16.mxu0 %v4396_v62  ;;  %v4466_v62 = vld [vmem:[#allocation10 + $0x1a0] ss:$8 sps:$4 sm:$0xff]  }
 0x224   :  { %3456 = vmatpush1.bf16.msra.mxu1 %v4439_v6 }
 0x225   :  { %3457 = vmatprep.subr.bf16.mxu1 %v4444_v7  ;;  %v4472_v7 = vld [vmem:[#allocation10 + $0x180] ss:$8 sps:$4 sm:$0xff]  }
 0x226   :  { %3417 = vmatpush1.bf16.msra.mxu0 %v4394_v1 }
 0x227   :  { %3418 = vmatprep.subr.bf16.mxu0 %v4399_v2 }
 0x228   :  { %3458 = vmatpush1.bf16.msra.mxu1 %v4442_v17 }
 0x229   :  { %3459 = vmatprep.subr.bf16.mxu1 %v4447_v18 }
 0x22a   :  { %3419 = vmatpush1.bf16.msra.mxu0 %v4397_v12  ;;  %v4469_v12 = vld [vmem:[#allocation10 + $0x190] ss:$8 sps:$4 sm:$0xff]  }
 0x22b   :  { %3420 = vmatprep.subr.bf16.mxu0 %v4402_v5 }
 0x22c   :  { %3460 = vmatpush1.bf16.msra.mxu1 %v4445_v21 }
 0x22d   :  { %3461 = vmatprep.subr.bf16.mxu1 %v4450_v22 }
 0x22e   :  { %3421 = vmatpush1.bf16.msra.mxu0 %v4400_v8  ;;  %v4474_v8 = vld [vmem:[#allocation10 + $0x184] ss:$8 sps:$4 sm:$0xff]  }
 0x22f   :  { %3422 = vmatprep.subr.bf16.mxu0 %v4405_v9 }
 0x230   :  { %3462 = vmatpush1.bf16.msra.mxu1 %v4448_v27 }
 0x231   :  { %3463 = vmatprep.subr.bf16.mxu1 %v4453_v29 }
 0x232   :  { %3423 = vmatpush2.bf16.msra.mxu0 %v4403_v19 }
 0x233   :  { %3424 = vmatprep.subr.bf16.mxu0 %v4408_v20 }
 0x234   :  { %3464 = vmatpush2.bf16.msra.mxu1 %v4451_v32 }
 0x235   :  { %3465 = vmatprep.subr.bf16.mxu1 %v4456_v33 }
 0x236   :  { %3425 = vmatpush2.bf16.msra.mxu0 %v4406_v14 }
 0x237   :  { %3426 = vmatprep.subr.bf16.mxu0 %v4411_v24 }
 0x238   :  { %3466 = vmatpush2.bf16.msra.mxu1 %v4454_v36 }
 0x239   :  { %3467 = vmatprep.subr.bf16.mxu1 %v4459_v37 }
 0x23a   :  { %3427 = vmatpush2.bf16.msra.mxu0 %v4409_v30  ;;  %v1377_v30 = vrot.slane %v1364_v48, %v242_v13 }
 0x23b   :  { %3428 = vmatprep.subr.bf16.mxu0 %v4414_v31  ;;  %v1381_v31 = vrot.slane %v1364_v48, %v246_v16 }
 0x23c   :  { %3468 = vmatpush2.bf16.msra.mxu1 %v4457_v39 }
 0x23d   :  { %3469 = vmatprep.subr.bf16.mxu1 %v4462_v41 }
 0x23e   :  { %3429 = vmatpush2.bf16.msra.mxu0 %v4412_v34 }
 0x23f   :  { %3430 = vmatprep.subr.bf16.mxu0 %v4417_v35 }
 0x240   :  { %3470 = vmatpush2.bf16.msra.mxu1 %v4460_v44 }
 0x241   :  { %3471 = vmatprep.subr.bf16.mxu1 %v4465_v46 }
 0x242   :  { %3431 = vmatpush2.bf16.msra.mxu0 %v4415_v38 }
 0x243   :  { %3432 = vmatprep.subr.bf16.mxu0 %v4420_v40 }
 0x244   :  { %3472 = vmatpush2.bf16.msra.mxu1 %v4463_v51 }
 0x245   :  { %3473 = vmatprep.subr.bf16.mxu1 %v4468_v60 }
 0x246   :  { %3433 = vmatpush2.bf16.msra.mxu0 %v4418_v58 }
 0x247   :  { %3434 = vmatprep.subr.bf16.mxu0 %v4423_v43 }
 0x248   :  { %3474 = vmatpush2.bf16.msra.mxu1 %v4466_v62  ;;  %v3494_v62 = vld [vmem:[%s4781_s7] sm:$0x3] }
 0x249   :  { %3475 = vmatprep.subr.bf16.mxu1 %v4471_v4 }
 0x24a   :  { %3435 = vmatpush2.bf16.msra.mxu0 %v4421_v49 }
 0x24b   :  { %3436 = vmatprep.subr.bf16.mxu0 %v4426_v50 }
 0x24c   :  { %3476 = vmatpush2.bf16.msra.mxu1 %v4469_v12 }
 0x24d   :  { %3477 = vmatprep.subr.bf16.mxu1 %v4474_v8 }
 0x24e   :  { %3437 = vmatpush2.bf16.msra.mxu0 %v4424_v25 }
 0x250   :  { %3478 = vmatpush2.bf16.msra.mxu1 %v4472_v7  ;;  %v3982_v7 = vld [vmem:[#allocation2] ss:$0 sm:$0xff] }
 0x251   :  { %v2782_v55 = vpop.f32.mrf.mxu0 }
 0x252   :  { %v2783_v57 = vadd.f32 %v2782_v55, %v2742_v28  ;;  %v2823_v59 = vpop.f32.mrf.mxu1  ;;  %v3074_v28 = vld [vmem:[%s4780_s6] sm:$0x3] }
 0x253   :  { %v2784_v61 = vpop.f32.mrf.mxu0  ;;  %v3079_v55 = vrot.slane %v3074_v28, %v4679_v11 }
 0x254   :  { %v2824_v63 = vadd.f32 %v2823_v59, %v2783_v57  ;;  %v2785_v0 = vadd.f32 %v2784_v61, %v2744_v56  ;;  %v2825_v1 = vpop.f32.mrf.mxu1  ;;  %v3083_v56 = vrot.slane %v3074_v28, %v4685_v15 }
 0x255   :  { %v2786_v2 = vpop.f32.mrf.mxu0 }
 0x256   :  { %vm2994_vm8 = vcmp.ge.f32.partialorder %v2824_v63, 0.0  ;;  %v2998_v47 = vmul.f32 0.2, %v2824_v63  ;;  %v2826_v45 = vadd.f32 %v2825_v1, %v2785_v0  ;;  %v2827_v3 = vpop.f32.mrf.mxu1 }
 0x257   :  { %v2787_v42 = vpop.f32.mrf.mxu0 }
 0x258   :  { %vm2995_vm9 = vcmp.ge.f32.partialorder %v2826_v45, 0.0  ;;  %v2999_v23 = vmul.f32 0.2, %v2826_v45  ;;  %v2828_v5 = vpop.f32.mrf.mxu1  ;;  %v3002_v6 = vsel %vm2994_vm8, %v2824_v63, %v2998_v47  ;;  %v3499_v47 = vrot.slane %v3494_v62, %v4679_v11 }
 0x259   :  { %v3006_v18 = vpack.c.bf16 %v3002_v6, %v3002_v6 }
 0x25a   :  { %v3003_v9 = vsel %vm2995_vm9, %v2826_v45, %v2999_v23  ;;  %v3503_v45 = vrot.slane %v3494_v62, %v4685_v15 }
 0x25b   :  { %v3007_v17 = vpack.c.bf16 %v3003_v9, %v3003_v9 }
 0x25d   :  { %3438 = vmatprep.mubr.bf16.mxu0 %v3007_v17 }
 0x25e   :  { %3439 = vmatmul.mubr.bf16.vlgmr.msra.gmra.mxu0 %v3006_v18 }
 0x291   :  { %v2864_v19 = vpop.f32.mrf.mxu0 }
 0x292   :  { %v2905_v20 = vpop.f32.mrf.mxu1  ;;  %v2865_v32 = vadd.f32 %v2864_v19, %v1377_v30 }
 0x293   :  { %v2866_v21 = vpop.f32.mrf.mxu0 }
 0x294   :  { %v2907_v22 = vpop.f32.mrf.mxu1  ;;  %v2867_v33 = vadd.f32 %v2866_v21, %v1381_v31  ;;  %v2906_v34 = vadd.f32 %v2905_v20, %v2865_v32 }
 0x295   :  { %v2868_v14 = vpop.f32.mrf.mxu0 }
 0x296   :  { %v2909_v24 = vpop.f32.mrf.mxu1  ;;  %v2908_v36 = vadd.f32 %v2907_v22, %v2867_v33 }
 0x297   :  { %v2869_v27 = vpop.f32.mrf.mxu0 }
 0x298   :  { %v2910_v29 = vpop.f32.mrf.mxu1 }
 0x2d1   :  { %v2946_v35 = vpop.f32.mrf.mxu0 }
 0x2d2   :  { %v2947_v37 = vadd.f32 %v2946_v35, %v2906_v34  ;;  %v2987_v38 = vpop.f32.mrf.mxu1 }
 0x2d3   :  { %v2948_v40 = vpop.f32.mrf.mxu0 }
 0x2d4   :  { %v2988_v39 = vadd.f32 %v2987_v38, %v2947_v37  ;;  %v2949_v41 = vadd.f32 %v2948_v40, %v2908_v36  ;;  %v2989_v58 = vpop.f32.mrf.mxu1 }
 0x2d5   :  { %v2950_v43 = vpop.f32.mrf.mxu0 }
 0x2d6   :  { %vm2996_vm10 = vcmp.ge.f32.partialorder %v2988_v39, 0.0  ;;  %v3000_v44 = vmul.f32 0.2, %v2988_v39  ;;  %v2990_v46 = vadd.f32 %v2989_v58, %v2949_v41  ;;  %v2991_v49 = vpop.f32.mrf.mxu1 }
 0x2d7   :  { %v2951_v13 = vpop.f32.mrf.mxu0 }
 0x2d8   :  { %vm2997_vm11 = vcmp.ge.f32.partialorder %v2990_v46, 0.0  ;;  %v3001_v10 = vmul.f32 0.2, %v2990_v46  ;;  %v2992_v16 = vpop.f32.mrf.mxu1  ;;  %v3004_v48 = vsel %vm2996_vm10, %v2988_v39, %v3000_v44 }
 0x2d9   :  { %v3008_v26 = vpack.c.bf16 %v3004_v48, %v3004_v48 }
 0x2da   :  { %v3005_v50 = vsel %vm2997_vm11, %v2990_v46, %v3001_v10 }
 0x2db   :  { %v3009_v51 = vpack.c.bf16 %v3005_v50, %v3005_v50 }
 0x2dd   :  { %3479 = vmatprep.mubr.bf16.mxu1 %v3009_v51 }
 0x2de   :  { %3480 = vmatmul.mubr.bf16.vlgmr.msra.gmra.mxu1 %v3008_v26 }
 0x31e   :  { %v3440_v52 = vpop.f32.mrf.mxu0 }
 0x31f   :  { %v3441_v57 = vadd.f32 %v3440_v52, %v3079_v55 }
 0x320   :  { %v3442_v25 = vpop.f32.mrf.mxu0 }
 0x321   :  { %v3443_v60 = vadd.f32 %v3442_v25, %v3083_v56 }
 0x322   :  { %v3444_v53 = vpop.f32.mrf.mxu0 }
 0x324   :  { %v3445_v54 = vpop.f32.mrf.mxu0 }
 0x39e   :  { %v3481_v59 = vpop.f32.mrf.mxu1 }
 0x39f   :  { %v3482_v61 = vadd.f32 %v3481_v59, %v3441_v57 }
 0x3a0   :  { %v3483_v63 = vpop.f32.mrf.mxu1 }
 0x3a1   :  { %vm3488_vm12 = vcmp.ge.f32.partialorder %v3482_v61, 0.0  ;;  %v3490_v0 = vmul.f32 0.2, %v3482_v61  ;;  %v3484_v1 = vadd.f32 %v3483_v63, %v3443_v60 }
 0x3a2   :  { %v3485_v2 = vpop.f32.mrf.mxu1 }
 0x3a3   :  { %vm3489_vm13 = vcmp.ge.f32.partialorder %v3484_v1, 0.0  ;;  %v3491_v3 = vmul.f32 0.2, %v3484_v1  ;;  %v3492_v4 = vsel %vm3488_vm12, %v3482_v61, %v3490_v0 }
 0x3a4   :  { %v3486_v42 = vpop.f32.mrf.mxu1  ;;  %v3506_v23 = vmul.f32 %v3499_v47, %v3492_v4 }
 0x3a5   :  { %v3493_v12 = vsel %vm3489_vm13, %v3484_v1, %v3491_v3 }
 0x3a6   :  { %v3507_v5 = vmul.f32 %v3503_v45, %v3493_v12 }
 0x3a8   :  { %v3508_v6 = vadd.f32 %v3507_v5, %v3506_v23 }
 0x3aa   :  { %3509 = vadd.xlane.f32.xlu0 %v3508_v6 }
 0x433   :  { %v3510_v8 = vpop.xlane.xlu0 %3509 }
 0x434   :  { %v3518_v9 = vadd.f32 %v3982_v7, %v3510_v8 }
 0x436   :  { %v3983_v17 = vmul.f32 -1.442695, %v3518_v9 }
 0x438   :  { %4475 = vpow2.f32 %v3983_v17 }
 0x445   :  { %v4476_v18 = vpop.eup %4475 }
 0x446   :  { %v3522_v19 = vadd.f32 1.0, %v4476_v18 }
 0x448   :  { %4477 = vrcp.f32 %v3522_v19 }
 0x455   :  { %v4478_v11 = vpop.eup %4477 }
 0x456   :  { %3526 = vst.msk [vmem:[%s4783_s9] sm:$0xff] %vm3525_vm14, %v4478_v11 }
 0x457   :  { %3531 = vsyncpa [#allocation4], 1 }
 0x458   :  { %3532 = vsyncpa [#allocation6], 1 }
 0x459   :  { %3533 = vsyncpa [#allocation9], 1 }

</bundles_post_ra>
